<compile_context>
chip_gen: v5e
topology: v5e:2x2
jax: 0.10.0
libtpu: 0.0.40
codegen_flags: <defaults>
</compile_context>

<pallas_src>
import functools

import jax
import jax.numpy as jnp
from jax.experimental import pallas as pl
from jax.experimental.pallas import tpu as pltpu


def _conv_block_kernel(x_ref, w_ref, b_ref, o_ref, *, K, Wp, OH, OW):
    """One image: x (1, C_in, S_pad) -> out (1, C_out, OH, OW).

    The padded spatial plane is flat on lanes with row stride Wp; tap (kh, kw)
    is the contiguous slice starting at kh*Wp + kw, so each tap contributes one
    (C_out, C_in) @ (C_in, OH*Wp) matmul.  Columns ow >= OW of each flat output
    row are junk and are simply never stored.
    """
    C_out = o_ref.shape[1]
    S = OH * Wp
    x = x_ref[0]                                    # (C_in, S_pad)

    acc = jnp.zeros((C_out, S), jnp.float32)
    for kh in range(K):
        for kw in range(K):
            off = kh * Wp + kw
            x_tap = x[:, off:off + S]               # (C_in, S)
            w_tap = w_ref[kh * K + kw]              # (C_out, C_in)
            acc = acc + jnp.dot(w_tap, x_tap,
                                preferred_element_type=jnp.float32)

    # folded conv-bias + BN shift, then relu
    y = jnp.maximum(acc + b_ref[...], 0.0)          # (C_out, S)

    # Store only the valid OW columns of each flat row into the NCHW output.
    for oh in range(OH):
        o_ref[0, :, oh, :] = y[:, oh * Wp: oh * Wp + OW].astype(o_ref.dtype)


def conv_block_pallas(x, weight, bias, bn, *, stride=1, padding=0, eps=1e-5):
    """x: (N, C_in, H, W) NCHW.  weight: (C_out, C_in, K, K).  bias: (C_out,).
    bn = (gamma, beta, running_mean, running_var), eval-mode BatchNorm."""
    N, C_in, H, W = x.shape
    C_out, C_in_w, K, K2 = weight.shape
    assert C_in_w == C_in and K == K2
    gamma, beta, mean, var = bn

    # Fold eval-mode BN into the conv:  BN(conv(x, W) + b) = conv(x, W*scale) + shift
    scale = gamma / jnp.sqrt(var + eps)                       # (C_out,)
    w_fold = weight * scale[:, None, None, None]              # (C_out, C_in, K, K)
    b_fold = ((bias - mean) * scale + beta).reshape(C_out, 1)

    # Per-tap weight matrices, laid out (tap, C_out, C_in) for the kernel.
    w_taps = jnp.transpose(w_fold, (2, 3, 0, 1)).reshape(K * K, C_out, C_in)

    # Spatially zero-pad once (border only) and flatten the plane onto lanes.
    Hp, Wp = H + 2 * padding, W + 2 * padding
    OH, OW = Hp - K + 1, Wp - K + 1                 # stride-1 output size
    assert OH >= 1 and OW >= 1
    x_pad = jnp.pad(x, ((0, 0), (0, 0), (padding, padding), (padding, padding)))
    # Tail-pad so every tap slice [off : off + OH*Wp] stays in bounds and the
    # lane dim is a multiple of 128 (lane-dense DMA).
    S_pad = pl.cdiv(Hp * Wp + (K - 1), 128) * 128
    x_flat = jnp.pad(x_pad.reshape(N, C_in, Hp * Wp),
                     ((0, 0), (0, 0), (0, S_pad - Hp * Wp)))

    kernel = functools.partial(_conv_block_kernel, K=K, Wp=Wp, OH=OH, OW=OW)

    out = pl.pallas_call(
        kernel,
        out_shape=jax.ShapeDtypeStruct((N, C_out, OH, OW), x.dtype),
        grid=(N,),
        in_specs=[
            pl.BlockSpec((1, C_in, S_pad), lambda n: (n, 0, 0)),      # one image
            pl.BlockSpec((K * K, C_out, C_in), lambda n: (0, 0, 0)),  # folded W
            pl.BlockSpec((C_out, 1), lambda n: (0, 0)),               # folded bias
        ],
        out_specs=pl.BlockSpec((1, C_out, OH, OW), lambda n: (n, 0, 0, 0)),
        compiler_params=pltpu.CompilerParams(
            dimension_semantics=("parallel",)),
    )(x_flat, w_taps, b_fold)

    if stride != 1:
        # TODO(synk): stride-s conv is computed as the stride-1 conv subsampled
        # on the output grid (correct, but recomputes the skipped pixels).
        out = out[:, :, ::stride, ::stride]
    return out


def make_params(key, in_c, out_c, k):
    """Deterministic synthetic Conv2d + BatchNorm2d(eval) parameters
    (independent keys for every stat, per the previous review)."""
    ks = jax.random.split(key, 6)
    weight = 0.1 * jax.random.normal(ks[0], (out_c, in_c, k, k), jnp.float32)
    bias = 0.1 * jax.random.normal(ks[1], (out_c,), jnp.float32)
    gamma = 1.0 + 0.1 * jax.random.normal(ks[2], (out_c,), jnp.float32)
    beta = 0.1 * jax.random.normal(ks[3], (out_c,), jnp.float32)
    mean = 0.1 * jax.random.normal(ks[4], (out_c,), jnp.float32)
    var = jnp.abs(0.5 + 0.1 * jax.random.normal(ks[5], (out_c,), jnp.float32))
    return weight, bias, (gamma, beta, mean, var)


def conv_block_ref(x, weight, bias, bn, *, stride=1, padding=0, eps=1e-5):
    """Pure-JAX reference of the same forward (NCHW, eval-mode BN)."""
    gamma, beta, mean, var = bn
    y = jax.lax.conv_general_dilated(
        x, weight, window_strides=(stride, stride),
        padding=[(padding, padding), (padding, padding)],
        dimension_numbers=("NCHW", "OIHW", "NCHW"))
    y = y + bias[None, :, None, None]
    y = (y - mean[None, :, None, None]) * \
        (gamma / jnp.sqrt(var + eps))[None, :, None, None] + beta[None, :, None, None]
    return jnp.maximum(y, 0.0)


if __name__ == "__main__":
    # Small ConvBlock config: in_c=4, out_c=8, k=3, s=1, p=1 on a 2x4x16x16 input.
    N, in_c, H, W = 2, 4, 16, 16
    out_c, k, s, p = 8, 3, 1, 1

    key = jax.random.PRNGKey(0)
    kx, kp = jax.random.split(key)
    x = jax.random.normal(kx, (N, in_c, H, W), jnp.float32)
    weight, bias, bn = make_params(kp, in_c, out_c, k)

    out = conv_block_pallas(x, weight, bias, bn, stride=s, padding=p)
    out = jax.block_until_ready(out)

    ref = conv_block_ref(x, weight, bias, bn, stride=s, padding=p)
    assert out.shape == ref.shape and out.dtype == x.dtype
    assert jnp.allclose(out, ref, atol=1e-4, rtol=1e-4)
    print("KERNEL_OK")
</pallas_src>

<mosaic_0001>
module attributes {stable_mosaic.version = 11 : i64} {
  func.func @_conv_block_kernel(%arg0: i32, %arg1: memref<1x4x384xf32, #tpu.memory_space<vmem>>, %arg2: memref<9x8x4xf32, #tpu.memory_space<vmem>>, %arg3: memref<8x1xf32, #tpu.memory_space<vmem>>, %arg4: memref<1x8x16x16xf32, #tpu.memory_space<vmem>>) attributes {dimension_semantics = [#tpu.dimension_semantics<parallel>], iteration_bounds = array<i64: 2>, scalar_prefetch = 0 : i64, scratch_operands = 0 : i64, tpu.core_type = #tpu.core_type<tc>, window_params = [{transform_indices = @transform_0, window_bounds = array<i64: 1, 4, 384>}, {pipeline_mode = #tpu.pipeline_mode<synchronous>, transform_indices = @transform_1, window_bounds = array<i64: 9, 8, 4>}, {pipeline_mode = #tpu.pipeline_mode<synchronous>, transform_indices = @transform_2, window_bounds = array<i64: 8, 1>}, {transform_indices = @transform_3, window_bounds = array<i64: 1, 8, 16, 16>}]} {
    %c0 = arith.constant 0 : index
    %c0_0 = arith.constant 0 : index
    %c0_1 = arith.constant 0 : index
    %0 = vector.load %arg1[%c0, %c0_0, %c0_1] : memref<1x4x384xf32, #tpu.memory_space<vmem>>, vector<1x4x384xf32>
    %1 = vector.shape_cast %0 : vector<1x4x384xf32> to vector<4x384xf32>
    %cst = arith.constant 0.000000e+00 : f32
    %2 = vector.broadcast %cst : f32 to vector<8x288xf32>
    %3 = vector.extract_strided_slice %1 {offsets = [0, 0], sizes = [4, 288], strides = [1, 1]} : vector<4x384xf32> to vector<4x288xf32>
    %c0_2 = arith.constant 0 : index
    %c0_3 = arith.constant 0 : index
    %c0_4 = arith.constant 0 : index
    %4 = vector.load %arg2[%c0_2, %c0_3, %c0_4] : memref<9x8x4xf32, #tpu.memory_space<vmem>>, vector<1x8x4xf32>
    %5 = vector.shape_cast %4 : vector<1x8x4xf32> to vector<8x4xf32>
    %cst_5 = arith.constant dense<0.000000e+00> : vector<8x288xf32>
    %6 = tpu.matmul %5, %3, %cst_5 {dimension_numbers = #tpu.dot_dimension_numbers<[1], [0], [0], [1], [0, 0, 1, 1], [], []>} : vector<8x4xf32>, vector<4x288xf32>, vector<8x288xf32> -> vector<8x288xf32>
    %7 = arith.addf %2, %6 : vector<8x288xf32>
    %8 = vector.extract_strided_slice %1 {offsets = [0, 1], sizes = [4, 288], strides = [1, 1]} : vector<4x384xf32> to vector<4x288xf32>
    %c1 = arith.constant 1 : index
    %c0_6 = arith.constant 0 : index
    %c0_7 = arith.constant 0 : index
    %9 = vector.load %arg2[%c1, %c0_6, %c0_7] : memref<9x8x4xf32, #tpu.memory_space<vmem>>, vector<1x8x4xf32>
    %10 = vector.shape_cast %9 : vector<1x8x4xf32> to vector<8x4xf32>
    %cst_8 = arith.constant dense<0.000000e+00> : vector<8x288xf32>
    %11 = tpu.matmul %10, %8, %cst_8 {dimension_numbers = #tpu.dot_dimension_numbers<[1], [0], [0], [1], [0, 0, 1, 1], [], []>} : vector<8x4xf32>, vector<4x288xf32>, vector<8x288xf32> -> vector<8x288xf32>
    %12 = arith.addf %7, %11 : vector<8x288xf32>
    %13 = vector.extract_strided_slice %1 {offsets = [0, 2], sizes = [4, 288], strides = [1, 1]} : vector<4x384xf32> to vector<4x288xf32>
    %c2 = arith.constant 2 : index
    %c0_9 = arith.constant 0 : index
    %c0_10 = arith.constant 0 : index
    %14 = vector.load %arg2[%c2, %c0_9, %c0_10] : memref<9x8x4xf32, #tpu.memory_space<vmem>>, vector<1x8x4xf32>
    %15 = vector.shape_cast %14 : vector<1x8x4xf32> to vector<8x4xf32>
    %cst_11 = arith.constant dense<0.000000e+00> : vector<8x288xf32>
    %16 = tpu.matmul %15, %13, %cst_11 {dimension_numbers = #tpu.dot_dimension_numbers<[1], [0], [0], [1], [0, 0, 1, 1], [], []>} : vector<8x4xf32>, vector<4x288xf32>, vector<8x288xf32> -> vector<8x288xf32>
    %17 = arith.addf %12, %16 : vector<8x288xf32>
    %18 = vector.extract_strided_slice %1 {offsets = [0, 18], sizes = [4, 288], strides = [1, 1]} : vector<4x384xf32> to vector<4x288xf32>
    %c3 = arith.constant 3 : index
    %c0_12 = arith.constant 0 : index
    %c0_13 = arith.constant 0 : index
    %19 = vector.load %arg2[%c3, %c0_12, %c0_13] : memref<9x8x4xf32, #tpu.memory_space<vmem>>, vector<1x8x4xf32>
    %20 = vector.shape_cast %19 : vector<1x8x4xf32> to vector<8x4xf32>
    %cst_14 = arith.constant dense<0.000000e+00> : vector<8x288xf32>
    %21 = tpu.matmul %20, %18, %cst_14 {dimension_numbers = #tpu.dot_dimension_numbers<[1], [0], [0], [1], [0, 0, 1, 1], [], []>} : vector<8x4xf32>, vector<4x288xf32>, vector<8x288xf32> -> vector<8x288xf32>
    %22 = arith.addf %17, %21 : vector<8x288xf32>
    %23 = vector.extract_strided_slice %1 {offsets = [0, 19], sizes = [4, 288], strides = [1, 1]} : vector<4x384xf32> to vector<4x288xf32>
    %c4 = arith.constant 4 : index
    %c0_15 = arith.constant 0 : index
    %c0_16 = arith.constant 0 : index
    %24 = vector.load %arg2[%c4, %c0_15, %c0_16] : memref<9x8x4xf32, #tpu.memory_space<vmem>>, vector<1x8x4xf32>
    %25 = vector.shape_cast %24 : vector<1x8x4xf32> to vector<8x4xf32>
    %cst_17 = arith.constant dense<0.000000e+00> : vector<8x288xf32>
    %26 = tpu.matmul %25, %23, %cst_17 {dimension_numbers = #tpu.dot_dimension_numbers<[1], [0], [0], [1], [0, 0, 1, 1], [], []>} : vector<8x4xf32>, vector<4x288xf32>, vector<8x288xf32> -> vector<8x288xf32>
    %27 = arith.addf %22, %26 : vector<8x288xf32>
    %28 = vector.extract_strided_slice %1 {offsets = [0, 20], sizes = [4, 288], strides = [1, 1]} : vector<4x384xf32> to vector<4x288xf32>
    %c5 = arith.constant 5 : index
    %c0_18 = arith.constant 0 : index
    %c0_19 = arith.constant 0 : index
    %29 = vector.load %arg2[%c5, %c0_18, %c0_19] : memref<9x8x4xf32, #tpu.memory_space<vmem>>, vector<1x8x4xf32>
    %30 = vector.shape_cast %29 : vector<1x8x4xf32> to vector<8x4xf32>
    %cst_20 = arith.constant dense<0.000000e+00> : vector<8x288xf32>
    %31 = tpu.matmul %30, %28, %cst_20 {dimension_numbers = #tpu.dot_dimension_numbers<[1], [0], [0], [1], [0, 0, 1, 1], [], []>} : vector<8x4xf32>, vector<4x288xf32>, vector<8x288xf32> -> vector<8x288xf32>
    %32 = arith.addf %27, %31 : vector<8x288xf32>
    %33 = vector.extract_strided_slice %1 {offsets = [0, 36], sizes = [4, 288], strides = [1, 1]} : vector<4x384xf32> to vector<4x288xf32>
    %c6 = arith.constant 6 : index
    %c0_21 = arith.constant 0 : index
    %c0_22 = arith.constant 0 : index
    %34 = vector.load %arg2[%c6, %c0_21, %c0_22] : memref<9x8x4xf32, #tpu.memory_space<vmem>>, vector<1x8x4xf32>
    %35 = vector.shape_cast %34 : vector<1x8x4xf32> to vector<8x4xf32>
    %cst_23 = arith.constant dense<0.000000e+00> : vector<8x288xf32>
    %36 = tpu.matmul %35, %33, %cst_23 {dimension_numbers = #tpu.dot_dimension_numbers<[1], [0], [0], [1], [0, 0, 1, 1], [], []>} : vector<8x4xf32>, vector<4x288xf32>, vector<8x288xf32> -> vector<8x288xf32>
    %37 = arith.addf %32, %36 : vector<8x288xf32>
    %38 = vector.extract_strided_slice %1 {offsets = [0, 37], sizes = [4, 288], strides = [1, 1]} : vector<4x384xf32> to vector<4x288xf32>
    %c7 = arith.constant 7 : index
    %c0_24 = arith.constant 0 : index
    %c0_25 = arith.constant 0 : index
    %39 = vector.load %arg2[%c7, %c0_24, %c0_25] : memref<9x8x4xf32, #tpu.memory_space<vmem>>, vector<1x8x4xf32>
    %40 = vector.shape_cast %39 : vector<1x8x4xf32> to vector<8x4xf32>
    %cst_26 = arith.constant dense<0.000000e+00> : vector<8x288xf32>
    %41 = tpu.matmul %40, %38, %cst_26 {dimension_numbers = #tpu.dot_dimension_numbers<[1], [0], [0], [1], [0, 0, 1, 1], [], []>} : vector<8x4xf32>, vector<4x288xf32>, vector<8x288xf32> -> vector<8x288xf32>
    %42 = arith.addf %37, %41 : vector<8x288xf32>
    %43 = vector.extract_strided_slice %1 {offsets = [0, 38], sizes = [4, 288], strides = [1, 1]} : vector<4x384xf32> to vector<4x288xf32>
    %c8 = arith.constant 8 : index
    %c0_27 = arith.constant 0 : index
    %c0_28 = arith.constant 0 : index
    %44 = vector.load %arg2[%c8, %c0_27, %c0_28] : memref<9x8x4xf32, #tpu.memory_space<vmem>>, vector<1x8x4xf32>
    %45 = vector.shape_cast %44 : vector<1x8x4xf32> to vector<8x4xf32>
    %cst_29 = arith.constant dense<0.000000e+00> : vector<8x288xf32>
    %46 = tpu.matmul %45, %43, %cst_29 {dimension_numbers = #tpu.dot_dimension_numbers<[1], [0], [0], [1], [0, 0, 1, 1], [], []>} : vector<8x4xf32>, vector<4x288xf32>, vector<8x288xf32> -> vector<8x288xf32>
    %47 = arith.addf %42, %46 : vector<8x288xf32>
    %c0_30 = arith.constant 0 : index
    %c0_31 = arith.constant 0 : index
    %48 = vector.load %arg3[%c0_30, %c0_31] : memref<8x1xf32, #tpu.memory_space<vmem>>, vector<8x1xf32>
    %49 = vector.broadcast %48 : vector<8x1xf32> to vector<8x288xf32>
    %50 = arith.addf %47, %49 : vector<8x288xf32>
    %cst_32 = arith.constant 0.000000e+00 : f32
    %51 = vector.broadcast %cst_32 : f32 to vector<8x288xf32>
    %52 = arith.maximumf %50, %51 : vector<8x288xf32>
    %53 = vector.extract_strided_slice %52 {offsets = [0, 0], sizes = [8, 16], strides = [1, 1]} : vector<8x288xf32> to vector<8x16xf32>
    %c0_33 = arith.constant 0 : index
    %c0_34 = arith.constant 0 : index
    %c0_35 = arith.constant 0 : index
    %c0_36 = arith.constant 0 : index
    %54 = vector.load %arg4[%c0_33, %c0_34, %c0_35, %c0_36] : memref<1x8x16x16xf32, #tpu.memory_space<vmem>>, vector<1x8x1x16xf32>
    %55 = vector.shape_cast %54 : vector<1x8x1x16xf32> to vector<8x16xf32>
    %56 = vector.shape_cast %53 : vector<8x16xf32> to vector<1x8x1x16xf32>
    tpu.vector_store %arg4[%c0_33, %c0_34, %c0_35, %c0_36], %56 {strides = array<i32>} : memref<1x8x16x16xf32, #tpu.memory_space<vmem>>, vector<1x8x1x16xf32>,
    %57 = vector.extract_strided_slice %52 {offsets = [0, 18], sizes = [8, 16], strides = [1, 1]} : vector<8x288xf32> to vector<8x16xf32>
    %c0_37 = arith.constant 0 : index
    %c0_38 = arith.constant 0 : index
    %c1_39 = arith.constant 1 : index
    %c0_40 = arith.constant 0 : index
    %58 = vector.load %arg4[%c0_37, %c0_38, %c1_39, %c0_40] : memref<1x8x16x16xf32, #tpu.memory_space<vmem>>, vector<1x8x1x16xf32>
    %59 = vector.shape_cast %58 : vector<1x8x1x16xf32> to vector<8x16xf32>
    %60 = vector.shape_cast %57 : vector<8x16xf32> to vector<1x8x1x16xf32>
    tpu.vector_store %arg4[%c0_37, %c0_38, %c1_39, %c0_40], %60 {strides = array<i32>} : memref<1x8x16x16xf32, #tpu.memory_space<vmem>>, vector<1x8x1x16xf32>,
    %61 = vector.extract_strided_slice %52 {offsets = [0, 36], sizes = [8, 16], strides = [1, 1]} : vector<8x288xf32> to vector<8x16xf32>
    %c0_41 = arith.constant 0 : index
    %c0_42 = arith.constant 0 : index
    %c2_43 = arith.constant 2 : index
    %c0_44 = arith.constant 0 : index
    %62 = vector.load %arg4[%c0_41, %c0_42, %c2_43, %c0_44] : memref<1x8x16x16xf32, #tpu.memory_space<vmem>>, vector<1x8x1x16xf32>
    %63 = vector.shape_cast %62 : vector<1x8x1x16xf32> to vector<8x16xf32>
    %64 = vector.shape_cast %61 : vector<8x16xf32> to vector<1x8x1x16xf32>
    tpu.vector_store %arg4[%c0_41, %c0_42, %c2_43, %c0_44], %64 {strides = array<i32>} : memref<1x8x16x16xf32, #tpu.memory_space<vmem>>, vector<1x8x1x16xf32>,
    %65 = vector.extract_strided_slice %52 {offsets = [0, 54], sizes = [8, 16], strides = [1, 1]} : vector<8x288xf32> to vector<8x16xf32>
    %c0_45 = arith.constant 0 : index
    %c0_46 = arith.constant 0 : index
    %c3_47 = arith.constant 3 : index
    %c0_48 = arith.constant 0 : index
    %66 = vector.load %arg4[%c0_45, %c0_46, %c3_47, %c0_48] : memref<1x8x16x16xf32, #tpu.memory_space<vmem>>, vector<1x8x1x16xf32>
    %67 = vector.shape_cast %66 : vector<1x8x1x16xf32> to vector<8x16xf32>
    %68 = vector.shape_cast %65 : vector<8x16xf32> to vector<1x8x1x16xf32>
    tpu.vector_store %arg4[%c0_45, %c0_46, %c3_47, %c0_48], %68 {strides = array<i32>} : memref<1x8x16x16xf32, #tpu.memory_space<vmem>>, vector<1x8x1x16xf32>,
    %69 = vector.extract_strided_slice %52 {offsets = [0, 72], sizes = [8, 16], strides = [1, 1]} : vector<8x288xf32> to vector<8x16xf32>
    %c0_49 = arith.constant 0 : index
    %c0_50 = arith.constant 0 : index
    %c4_51 = arith.constant 4 : index
    %c0_52 = arith.constant 0 : index
    %70 = vector.load %arg4[%c0_49, %c0_50, %c4_51, %c0_52] : memref<1x8x16x16xf32, #tpu.memory_space<vmem>>, vector<1x8x1x16xf32>
    %71 = vector.shape_cast %70 : vector<1x8x1x16xf32> to vector<8x16xf32>
    %72 = vector.shape_cast %69 : vector<8x16xf32> to vector<1x8x1x16xf32>
    tpu.vector_store %arg4[%c0_49, %c0_50, %c4_51, %c0_52], %72 {strides = array<i32>} : memref<1x8x16x16xf32, #tpu.memory_space<vmem>>, vector<1x8x1x16xf32>,
    %73 = vector.extract_strided_slice %52 {offsets = [0, 90], sizes = [8, 16], strides = [1, 1]} : vector<8x288xf32> to vector<8x16xf32>
    %c0_53 = arith.constant 0 : index
    %c0_54 = arith.constant 0 : index
    %c5_55 = arith.constant 5 : index
    %c0_56 = arith.constant 0 : index
    %74 = vector.load %arg4[%c0_53, %c0_54, %c5_55, %c0_56] : memref<1x8x16x16xf32, #tpu.memory_space<vmem>>, vector<1x8x1x16xf32>
    %75 = vector.shape_cast %74 : vector<1x8x1x16xf32> to vector<8x16xf32>
    %76 = vector.shape_cast %73 : vector<8x16xf32> to vector<1x8x1x16xf32>
    tpu.vector_store %arg4[%c0_53, %c0_54, %c5_55, %c0_56], %76 {strides = array<i32>} : memref<1x8x16x16xf32, #tpu.memory_space<vmem>>, vector<1x8x1x16xf32>,
    %77 = vector.extract_strided_slice %52 {offsets = [0, 108], sizes = [8, 16], strides = [1, 1]} : vector<8x288xf32> to vector<8x16xf32>
    %c0_57 = arith.constant 0 : index
    %c0_58 = arith.constant 0 : index
    %c6_59 = arith.constant 6 : index
    %c0_60 = arith.constant 0 : index
    %78 = vector.load %arg4[%c0_57, %c0_58, %c6_59, %c0_60] : memref<1x8x16x16xf32, #tpu.memory_space<vmem>>, vector<1x8x1x16xf32>
    %79 = vector.shape_cast %78 : vector<1x8x1x16xf32> to vector<8x16xf32>
    %80 = vector.shape_cast %77 : vector<8x16xf32> to vector<1x8x1x16xf32>
    tpu.vector_store %arg4[%c0_57, %c0_58, %c6_59, %c0_60], %80 {strides = array<i32>} : memref<1x8x16x16xf32, #tpu.memory_space<vmem>>, vector<1x8x1x16xf32>,
    %81 = vector.extract_strided_slice %52 {offsets = [0, 126], sizes = [8, 16], strides = [1, 1]} : vector<8x288xf32> to vector<8x16xf32>
    %c0_61 = arith.constant 0 : index
    %c0_62 = arith.constant 0 : index
    %c7_63 = arith.constant 7 : index
    %c0_64 = arith.constant 0 : index
    %82 = vector.load %arg4[%c0_61, %c0_62, %c7_63, %c0_64] : memref<1x8x16x16xf32, #tpu.memory_space<vmem>>, vector<1x8x1x16xf32>
    %83 = vector.shape_cast %82 : vector<1x8x1x16xf32> to vector<8x16xf32>
    %84 = vector.shape_cast %81 : vector<8x16xf32> to vector<1x8x1x16xf32>
    tpu.vector_store %arg4[%c0_61, %c0_62, %c7_63, %c0_64], %84 {strides = array<i32>} : memref<1x8x16x16xf32, #tpu.memory_space<vmem>>, vector<1x8x1x16xf32>,
    %85 = vector.extract_strided_slice %52 {offsets = [0, 144], sizes = [8, 16], strides = [1, 1]} : vector<8x288xf32> to vector<8x16xf32>
    %c0_65 = arith.constant 0 : index
    %c0_66 = arith.constant 0 : index
    %c8_67 = arith.constant 8 : index
    %c0_68 = arith.constant 0 : index
    %86 = vector.load %arg4[%c0_65, %c0_66, %c8_67, %c0_68] : memref<1x8x16x16xf32, #tpu.memory_space<vmem>>, vector<1x8x1x16xf32>
    %87 = vector.shape_cast %86 : vector<1x8x1x16xf32> to vector<8x16xf32>
    %88 = vector.shape_cast %85 : vector<8x16xf32> to vector<1x8x1x16xf32>
    tpu.vector_store %arg4[%c0_65, %c0_66, %c8_67, %c0_68], %88 {strides = array<i32>} : memref<1x8x16x16xf32, #tpu.memory_space<vmem>>, vector<1x8x1x16xf32>,
    %89 = vector.extract_strided_slice %52 {offsets = [0, 162], sizes = [8, 16], strides = [1, 1]} : vector<8x288xf32> to vector<8x16xf32>
    %c0_69 = arith.constant 0 : index
    %c0_70 = arith.constant 0 : index
    %c9 = arith.constant 9 : index
    %c0_71 = arith.constant 0 : index
    %90 = vector.load %arg4[%c0_69, %c0_70, %c9, %c0_71] : memref<1x8x16x16xf32, #tpu.memory_space<vmem>>, vector<1x8x1x16xf32>
    %91 = vector.shape_cast %90 : vector<1x8x1x16xf32> to vector<8x16xf32>
    %92 = vector.shape_cast %89 : vector<8x16xf32> to vector<1x8x1x16xf32>
    tpu.vector_store %arg4[%c0_69, %c0_70, %c9, %c0_71], %92 {strides = array<i32>} : memref<1x8x16x16xf32, #tpu.memory_space<vmem>>, vector<1x8x1x16xf32>,
    %93 = vector.extract_strided_slice %52 {offsets = [0, 180], sizes = [8, 16], strides = [1, 1]} : vector<8x288xf32> to vector<8x16xf32>
    %c0_72 = arith.constant 0 : index
    %c0_73 = arith.constant 0 : index
    %c10 = arith.constant 10 : index
    %c0_74 = arith.constant 0 : index
    %94 = vector.load %arg4[%c0_72, %c0_73, %c10, %c0_74] : memref<1x8x16x16xf32, #tpu.memory_space<vmem>>, vector<1x8x1x16xf32>
    %95 = vector.shape_cast %94 : vector<1x8x1x16xf32> to vector<8x16xf32>
    %96 = vector.shape_cast %93 : vector<8x16xf32> to vector<1x8x1x16xf32>
    tpu.vector_store %arg4[%c0_72, %c0_73, %c10, %c0_74], %96 {strides = array<i32>} : memref<1x8x16x16xf32, #tpu.memory_space<vmem>>, vector<1x8x1x16xf32>,
    %97 = vector.extract_strided_slice %52 {offsets = [0, 198], sizes = [8, 16], strides = [1, 1]} : vector<8x288xf32> to vector<8x16xf32>
    %c0_75 = arith.constant 0 : index
    %c0_76 = arith.constant 0 : index
    %c11 = arith.constant 11 : index
    %c0_77 = arith.constant 0 : index
    %98 = vector.load %arg4[%c0_75, %c0_76, %c11, %c0_77] : memref<1x8x16x16xf32, #tpu.memory_space<vmem>>, vector<1x8x1x16xf32>
    %99 = vector.shape_cast %98 : vector<1x8x1x16xf32> to vector<8x16xf32>
    %100 = vector.shape_cast %97 : vector<8x16xf32> to vector<1x8x1x16xf32>
    tpu.vector_store %arg4[%c0_75, %c0_76, %c11, %c0_77], %100 {strides = array<i32>} : memref<1x8x16x16xf32, #tpu.memory_space<vmem>>, vector<1x8x1x16xf32>,
    %101 = vector.extract_strided_slice %52 {offsets = [0, 216], sizes = [8, 16], strides = [1, 1]} : vector<8x288xf32> to vector<8x16xf32>
    %c0_78 = arith.constant 0 : index
    %c0_79 = arith.constant 0 : index
    %c12 = arith.constant 12 : index
    %c0_80 = arith.constant 0 : index
    %102 = vector.load %arg4[%c0_78, %c0_79, %c12, %c0_80] : memref<1x8x16x16xf32, #tpu.memory_space<vmem>>, vector<1x8x1x16xf32>
    %103 = vector.shape_cast %102 : vector<1x8x1x16xf32> to vector<8x16xf32>
    %104 = vector.shape_cast %101 : vector<8x16xf32> to vector<1x8x1x16xf32>
    tpu.vector_store %arg4[%c0_78, %c0_79, %c12, %c0_80], %104 {strides = array<i32>} : memref<1x8x16x16xf32, #tpu.memory_space<vmem>>, vector<1x8x1x16xf32>,
    %105 = vector.extract_strided_slice %52 {offsets = [0, 234], sizes = [8, 16], strides = [1, 1]} : vector<8x288xf32> to vector<8x16xf32>
    %c0_81 = arith.constant 0 : index
    %c0_82 = arith.constant 0 : index
    %c13 = arith.constant 13 : index
    %c0_83 = arith.constant 0 : index
    %106 = vector.load %arg4[%c0_81, %c0_82, %c13, %c0_83] : memref<1x8x16x16xf32, #tpu.memory_space<vmem>>, vector<1x8x1x16xf32>
    %107 = vector.shape_cast %106 : vector<1x8x1x16xf32> to vector<8x16xf32>
    %108 = vector.shape_cast %105 : vector<8x16xf32> to vector<1x8x1x16xf32>
    tpu.vector_store %arg4[%c0_81, %c0_82, %c13, %c0_83], %108 {strides = array<i32>} : memref<1x8x16x16xf32, #tpu.memory_space<vmem>>, vector<1x8x1x16xf32>,
    %109 = vector.extract_strided_slice %52 {offsets = [0, 252], sizes = [8, 16], strides = [1, 1]} : vector<8x288xf32> to vector<8x16xf32>
    %c0_84 = arith.constant 0 : index
    %c0_85 = arith.constant 0 : index
    %c14 = arith.constant 14 : index
    %c0_86 = arith.constant 0 : index
    %110 = vector.load %arg4[%c0_84, %c0_85, %c14, %c0_86] : memref<1x8x16x16xf32, #tpu.memory_space<vmem>>, vector<1x8x1x16xf32>
    %111 = vector.shape_cast %110 : vector<1x8x1x16xf32> to vector<8x16xf32>
    %112 = vector.shape_cast %109 : vector<8x16xf32> to vector<1x8x1x16xf32>
    tpu.vector_store %arg4[%c0_84, %c0_85, %c14, %c0_86], %112 {strides = array<i32>} : memref<1x8x16x16xf32, #tpu.memory_space<vmem>>, vector<1x8x1x16xf32>,
    %113 = vector.extract_strided_slice %52 {offsets = [0, 270], sizes = [8, 16], strides = [1, 1]} : vector<8x288xf32> to vector<8x16xf32>
    %c0_87 = arith.constant 0 : index
    %c0_88 = arith.constant 0 : index
    %c15 = arith.constant 15 : index
    %c0_89 = arith.constant 0 : index
    %114 = vector.load %arg4[%c0_87, %c0_88, %c15, %c0_89] : memref<1x8x16x16xf32, #tpu.memory_space<vmem>>, vector<1x8x1x16xf32>
    %115 = vector.shape_cast %114 : vector<1x8x1x16xf32> to vector<8x16xf32>
    %116 = vector.shape_cast %113 : vector<8x16xf32> to vector<1x8x1x16xf32>
    tpu.vector_store %arg4[%c0_87, %c0_88, %c15, %c0_89], %116 {strides = array<i32>} : memref<1x8x16x16xf32, #tpu.memory_space<vmem>>, vector<1x8x1x16xf32>,
    return
  }
  func.func @transform_0(%arg0: i32) -> (i32, i32, i32) {
    %c0_i32 = arith.constant 0 : i32
    %c0_i32_0 = arith.constant 0 : i32
    %c0_i32_1 = arith.constant 0 : i32
    return %arg0, %c0_i32, %c0_i32_0 : i32, i32, i32
  }
  func.func @transform_1(%arg0: i32) -> (i32, i32, i32) {
    %c0_i32 = arith.constant 0 : i32
    %c0_i32_0 = arith.constant 0 : i32
    %c0_i32_1 = arith.constant 0 : i32
    %c0_i32_2 = arith.constant 0 : i32
    return %c0_i32, %c0_i32_0, %c0_i32_1 : i32, i32, i32
  }
  func.func @transform_2(%arg0: i32) -> (i32, i32) {
    %c0_i32 = arith.constant 0 : i32
    %c0_i32_0 = arith.constant 0 : i32
    %c0_i32_1 = arith.constant 0 : i32
    return %c0_i32, %c0_i32_0 : i32, i32
  }
  func.func @transform_3(%arg0: i32) -> (i32, i32, i32, i32) {
    %c0_i32 = arith.constant 0 : i32
    %c0_i32_0 = arith.constant 0 : i32
    %c0_i32_1 = arith.constant 0 : i32
    %c0_i32_2 = arith.constant 0 : i32
    return %arg0, %c0_i32, %c0_i32_0, %c0_i32_1 : i32, i32, i32, i32
  }
}

</mosaic_0001>

<bundles_post_ra>
// kernel: tpu_custom_call.1
= control target key start
LH: loop header
LB: loop body
LE: loop exit
PB: predicated region body
PF: predicated region fallthrough
CT: control target
= control target key end

     0   :  { %8 = vsyncpa [#allocation3], 0  ;;  %s2813_s0 = inlined_call_operand.vmem [shape: f32[2,4,384], index: 0, kind: input, shape index: {}]   ;;  %s2814_s1 = inlined_call_operand.vmem [shape: f32[9,8,4], index: 1, kind: input, shape index: {}]   ;;  %s2815_s2 = inlined_call_operand.vmem [shape: f32[8,1], index: 2, kind: input, shape index: {}]   ;;  %s2816_s3 = inlined_call_operand.hbm [shape: f32[2,8,16,16], index: 3, kind: output, shape index: {}]  }
   0x1   :  { %10 = vsyncpa [#allocation3 + $0x1], 0  ;;  %s1960_s12 = smov 0   ;;  %s1962_s13 = smov 0  }
   0x2   :  { %s1964_s14 = smov 0   ;;  %s1966_s15 = smov 0  }
   0x3 LB: > { %s1981_s16 = sadd.s32 4294967295, %s1914_s15   ;;  %s1713_s17 = sadd.s32 4294967294, %s1914_s15   ;;  %s1914_s15 = sphi %s1966_s15, %s2822_s15   ;;  %s1910_s14 = sphi %s1964_s14, %s2821_s14   ;;  %s1906_s13 = sphi %s1962_s13, %s2820_s13   ;;  %s1902_s12 = sphi %s1960_s12, %s2819_s12  }
   0x4   : > { %s1985_s18 = sadd.s32 1, %s1914_s15   ;;  %s91_s19 = sadd.s32 1, %s1910_s14 }
   0x5   : > { %s88_s20 = ssub.s32 %s1914_s15, %s1985_s18  ;;  %p101_p0 = scmp.ne.s32.totalorder %s1910_s14, %s1906_s13 }
   0x6   : > { %p89_p1 = scmp.eq.s32.totalorder %s88_s20, 0  ;;  %p102_p2 = scmp.eq.s32.totalorder %s1981_s16, 1 }
   0x7   : > { %p107_p3 = scmp.ne.s32.totalorder %s1906_s13, %s1902_s12  ;;  %p108_p4 = scmp.eq.s32.totalorder %s1713_s17, 1 }
   0x8   : > { %s1996_s21 = scalar_select %p89_p1, %s1910_s14, %s91_s19  }
   0x9   : > { %p1998_p5 = por %p102_p2, %p101_p0  ;;  %p2002_p6 = por %p108_p4, %p107_p3 }
   0xa   : > { %p1716_p7 = scmp.ge.s32.totalorder %s1914_s15, 1  ;;  %p140_p8 = scmp.lt.s32.totalorder %s1914_s15, 3 }
   0xc   : > { %p141_p9 = pnand %p1716_p7, %p140_p8 }
   0xd   : > { %p164_p10 = scmp.lt.s32.totalorder (!%p141_p9), %s1981_s16, 1  ;;  %s1917_s29 = smov (!%p141_p9), 127  }
   0xe   : > { %144 = sbr.rel (%p141_p9) target bundleno = 828 (0x33c), region = 32  ;;  %s1918_s5 = smov (!%p141_p9), 126  }
   0xf   : > { %s1919_s6 = smov (!%p141_p9), 110   ;;  %s1920_s7 = smov (!%p141_p9), 109  }
  0x10   : > { %s1921_s8 = smov (!%p141_p9), 108   ;;  %s1922_s9 = smov (!%p141_p9), 92  }
  0x11   : > { %s1923_s10 = smov (!%p141_p9), 91   ;;  %s1924_s11 = smov (!%p141_p9), 90  }
  0x12   : > { %s161_s20 = sand.u32 (!%p141_p9), 1, %s1906_s13   ;;  %s1925_s26 = smov (!%p141_p9), 56  }
  0x13   : > { %v1916_v0 = vmov 0   ;;  %s165_s24 = scalar_select %p164_p10, %s1981_s16, 1  ;;  %v960_v9 = vld [vmem:[%s2815_s2] sm:$0xff]  ;;  %vm195_vm0 = vcmask 1043456   ;;  %vm191_vm1 = vcmask 31744   ;;  %vm351_vm2 = vcmask 1031168  }
  0x14   : > { %1851 = vset.pattern.permute.xlu0 %v1916_v0  ;;  %v171_v31 = vld [vmem:[%s2814_s1] sm:$0xff]  ;;  %v1719_v34 = vld [vmem:[%s2814_s1 + $0x8] sm:$0xff]  ;;  %v1732_v38 = vld [vmem:[%s2814_s1 + $0x10] sm:$0xff]  ;;  %vm188_vm3 = vcmask 1039360   ;;  %vm440_vm4 = vcmask 900096   ;;  %vm529_vm5 = vcmask 891904  }
  0x15   : > { %s1787_s25 = smul.u32 12, %s165_s24  ;;  %v1739_v43 = vld [vmem:[%s2814_s1 + $0x18] sm:$0xff]  ;;  %v1746_v55 = vld [vmem:[%s2814_s1 + $0x20] sm:$0xff]  ;;  %vm618_vm6 = vcmask 883712   ;;  %v1753_v61 = vld [vmem:[%s2814_s1 + $0x28] sm:$0xff]  ;;  %vm707_vm7 = vcmask 752640  }
  0x16   : > { %vm796_vm8 = vcmask 744448   ;;  %vm885_vm9 = vcmask 736256   ;;  %s1717_s24 = sshll.u32 %s161_s20, 7  ;;  %vm987_vm10 = vcmask 122880   ;;  %s1926_s27 = smov 74   ;;  %vm1198_vm11 = vcmask 1040384  }
  0x17   : > { %s168_s28 = scalar_lea.vmem %s2813_s0, %s1787_s25  ;;  %s2145_s25 = scalar_lea.vmem [#allocation2], %s1717_s24  ;;  %vm1203_vm12 = vcmask 1042434   ;;  %vm1206_vm13 = vcmask 1043459   ;;  %vm1200_vm14 = vcmask 1041409   ;;  %vm1212_vm15 = vcmask 1045509  }
  0x18   : > { %v2013_v1 = vld [vmem:[%s168_s28] sm:$0xff]  ;;  %v2015_v2 = vld [vmem:[%s168_s28 + $0x8] sm:$0xf]  ;;  %s1927_s28 = smov 94   ;;  %s1929_s30 = smov 40  }
  0x19   : > { %176 = vst [vmem:[#allocation1] ss:$2 sm:$0xff] %v2013_v1  ;;  %s1930_s4 = smov 112   ;;  %s1786_s17 = sshll.u32 %s1981_s16, 7 }
  0x1a   : > { %178 = vst [vmem:[#allocation1 + $0x10] ss:$2 sm:$0xff] %v2015_v2 }
  0x20   : > { %v179_v3 = vld.sshfl [vmem:[#allocation1] sm:$0xff pattern:$0x75316420]  ;;  %v180_v4 = vld.sshfl [vmem:[#allocation1 + $0x8] sm:$0xff pattern:$0x75316420] }
  0x21   : > { %182 = vrot.lane.b32.xlu0 %v179_v3, %s1917_s29  ;;  %v181_v5 = vld.sshfl [vmem:[#allocation1 + $0x10] sm:$0xff pattern:$0x75316420]  ;;  %262 = vst [vmem:[#allocation1] ss:$2 sm:$0xff] %v2013_v1 }
  0x22   : > { %186 = vrot.lane.b32.xlu1 %v181_v5, %s1917_s29  ;;  %264 = vst [vmem:[#allocation1 + $0x10] ss:$2 sm:$0xff] %v2015_v2  ;;  %v1760_v3 = vld [vmem:[%s2814_s1 + $0x30] sm:$0xff] }
  0x28   : > { %v2021_v6 = vld.sshfl [vmem:[#allocation1] sm:$0xff pattern:$0x75316420]  ;;  %v2023_v7 = vld.sshfl [vmem:[#allocation1 + $0x8] sm:$0xff pattern:$0x75316420] }
  0x29   : > { %184 = vrot.lane.b32.xlu0 %v180_v4, %s1917_s29  ;;  %339 = vst [vmem:[#allocation1] ss:$2 sm:$0xff] %v2013_v1  ;;  %v2026_v8 = vld.sshfl [vmem:[#allocation1 + $0x10] sm:$0xff pattern:$0x75316420]  ;;  %1726 = vmatpush.msk.msra.mxu3 %vm195_vm0, %v2021_v6  ;;  %s1928_s29 = smov 20  }
  0x2a   : > { %341 = vst [vmem:[#allocation1 + $0x10] ss:$2 sm:$0xff] %v2015_v2  ;;  %1727 = vmatmul.msk.f32.vlgmr.msra.gmra.mxu3 %vm191_vm1, %v171_v31 }
  0x30   : > { %v342_v10 = vld.sshfl [vmem:[#allocation1] sm:$0xff pattern:$0x75316420]  ;;  %v343_v11 = vld.sshfl [vmem:[#allocation1 + $0x8] sm:$0xff pattern:$0x75316420] }
  0x31   : > { %963 = vperm.xlu0 %1851, %v960_v9   ;;  %345 = vrot.lane.b32.xlu1 %v342_v10, %s1918_s5  ;;  %428 = vst [vmem:[#allocation1] ss:$2 sm:$0xff] %v2013_v1  ;;  %v344_v12 = vld.sshfl [vmem:[#allocation1 + $0x10] sm:$0xff pattern:$0x75316420] }
  0x32   : > { %347 = vrot.lane.b32.xlu2 %v343_v11, %s1918_s5  ;;  %430 = vst [vmem:[#allocation1 + $0x10] ss:$2 sm:$0xff] %v2015_v2 }
  0x38   : > { %v432_v13 = vld.sshfl [vmem:[#allocation1 + $0x8] sm:$0xff pattern:$0x75316420]  ;;  %v431_v14 = vld.sshfl [vmem:[#allocation1] sm:$0xff pattern:$0x75316420] }
  0x39   : > { %436 = vrot.lane.b32.xlu1 %v432_v13, %s1919_s6  ;;  %434 = vrot.lane.b32.xlu0 %v431_v14, %s1919_s6  ;;  %517 = vst [vmem:[#allocation1] ss:$2 sm:$0xff] %v2013_v1  ;;  %v433_v15 = vld.sshfl [vmem:[#allocation1 + $0x10] sm:$0xff pattern:$0x75316420]  ;;  %v1774_v14 = vld [vmem:[%s2814_s1 + $0x40] sm:$0xff] }
  0x3a   : > { %349 = vrot.lane.b32.xlu2 %v344_v12, %s1918_s5  ;;  %519 = vst [vmem:[#allocation1 + $0x10] ss:$2 sm:$0xff] %v2015_v2  ;;  %s1931_s5 = smov 38  }
  0x40   : > { %v521_v16 = vld.sshfl [vmem:[#allocation1 + $0x8] sm:$0xff pattern:$0x75316420]  ;;  %v520_v17 = vld.sshfl [vmem:[#allocation1] sm:$0xff pattern:$0x75316420] }
  0x41   : > { %525 = vrot.lane.b32.xlu1 %v521_v16, %s1920_s7  ;;  %523 = vrot.lane.b32.xlu0 %v520_v17, %s1920_s7  ;;  %606 = vst [vmem:[#allocation1] ss:$2 sm:$0xff] %v2013_v1  ;;  %v522_v18 = vld.sshfl [vmem:[#allocation1 + $0x10] sm:$0xff pattern:$0x75316420] }
  0x42   : > { %438 = vrot.lane.b32.xlu2 %v433_v15, %s1919_s6  ;;  %608 = vst [vmem:[#allocation1 + $0x10] ss:$2 sm:$0xff] %v2015_v2 }
  0x48   : > { %v610_v19 = vld.sshfl [vmem:[#allocation1 + $0x8] sm:$0xff pattern:$0x75316420]  ;;  %v609_v20 = vld.sshfl [vmem:[#allocation1] sm:$0xff pattern:$0x75316420] }
  0x49   : > { %614 = vrot.lane.b32.xlu1 %v610_v19, %s1921_s8  ;;  %612 = vrot.lane.b32.xlu0 %v609_v20, %s1921_s8  ;;  %695 = vst [vmem:[#allocation1] ss:$2 sm:$0xff] %v2013_v1  ;;  %v611_v21 = vld.sshfl [vmem:[#allocation1 + $0x10] sm:$0xff pattern:$0x75316420] }
  0x4a   : > { %527 = vrot.lane.b32.xlu2 %v522_v18, %s1920_s7  ;;  %697 = vst [vmem:[#allocation1 + $0x10] ss:$2 sm:$0xff] %v2015_v2  ;;  %s1932_s7 = smov 58  }
  0x50   : > { %v699_v22 = vld.sshfl [vmem:[#allocation1 + $0x8] sm:$0xff pattern:$0x75316420]  ;;  %v698_v23 = vld.sshfl [vmem:[#allocation1] sm:$0xff pattern:$0x75316420] }
  0x51   : > { %703 = vrot.lane.b32.xlu1 %v699_v22, %s1922_s9  ;;  %701 = vrot.lane.b32.xlu0 %v698_v23, %s1922_s9  ;;  %784 = vst [vmem:[#allocation1] ss:$2 sm:$0xff] %v2013_v1  ;;  %v700_v24 = vld.sshfl [vmem:[#allocation1 + $0x10] sm:$0xff pattern:$0x75316420] }
  0x52   : > { %616 = vrot.lane.b32.xlu2 %v611_v21, %s1921_s8  ;;  %786 = vst [vmem:[#allocation1 + $0x10] ss:$2 sm:$0xff] %v2015_v2  ;;  %s1933_s8 = smov 76  }
  0x58   : > { %v788_v25 = vld.sshfl [vmem:[#allocation1 + $0x8] sm:$0xff pattern:$0x75316420]  ;;  %v787_v26 = vld.sshfl [vmem:[#allocation1] sm:$0xff pattern:$0x75316420] }
  0x59   : > { %792 = vrot.lane.b32.xlu1 %v788_v25, %s1923_s10  ;;  %790 = vrot.lane.b32.xlu0 %v787_v26, %s1923_s10  ;;  %873 = vst [vmem:[#allocation1] ss:$2 sm:$0xff] %v2013_v1  ;;  %v789_v27 = vld.sshfl [vmem:[#allocation1 + $0x10] sm:$0xff pattern:$0x75316420] }
  0x5a   : > { %705 = vrot.lane.b32.xlu2 %v700_v24, %s1922_s9  ;;  %875 = vst [vmem:[#allocation1 + $0x10] ss:$2 sm:$0xff] %v2015_v2 }
  0x60   : > { %v877_v28 = vld.sshfl [vmem:[#allocation1 + $0x8] sm:$0xff pattern:$0x75316420]  ;;  %v876_v29 = vld.sshfl [vmem:[#allocation1] sm:$0xff pattern:$0x75316420] }
  0x61   : > { %881 = vrot.lane.b32.xlu1 %v877_v28, %s1924_s11  ;;  %879 = vrot.lane.b32.xlu0 %v876_v29, %s1924_s11  ;;  %v878_v30 = vld.sshfl [vmem:[#allocation1 + $0x10] sm:$0xff pattern:$0x75316420] }
  0x62   : > { %794 = vrot.lane.b32.xlu2 %v789_v27, %s1923_s10  ;;  %s1936_s10 = smov 4  }
  0x6a   : > { %883 = vrot.lane.b32.xlu2 %v878_v30, %s1924_s11  ;;  %s1937_s11 = smov 114  }
  0x8c   : > { %v348_v32 = vpop.permute.xlu2 %347 }
  0x93   : > { %v183_v33 = vpop.permute.xlu0 %182 }
  0x94   : > { %v187_v35 = vpop.permute.xlu1 %186  ;;  %v350_v36 = vpop.permute.xlu2 %349 }
  0x95   : > { %1724 = vmatpush.msk.msra.mxu2 %vm195_vm0, %v187_v35  ;;  %v353_v37 = vsel %vm351_vm2, %v348_v32, %v350_v36 }
  0x96   : > { %1725 = vmatmul.msk.f32.vlgmr.msra.gmra.mxu2 %vm191_vm1, %v1719_v34  ;;  %1735 = vmatpush.msk.msrb.mxu3 %vm195_vm0, %v353_v37 }
  0x97   : > { %1736 = vmatmul.msk.f32.vlgmr.msrb.gmra.mxu3 %vm191_vm1, %v1732_v38 }
  0x9b   : > { %v185_v39 = vpop.permute.xlu0 %184 }
  0x9c   : > { %v189_v40 = vsel %vm188_vm3, %v183_v33, %v185_v39  ;;  %v190_v41 = vsel %vm188_vm3, %v185_v39, %v187_v35  ;;  %v439_v42 = vpop.permute.xlu2 %438  ;;  %vm1218_vm3 = vcmask 1046528  }
  0x9d   : > { %1720 = vmatpush.msk.msra.mxu0 %vm195_vm0, %v189_v40  ;;  %1722 = vmatpush.msk.msra.mxu1 %vm195_vm0, %v190_v41 }
  0x9e   : > { %1721 = vmatmul.msk.f32.vlgmr.msra.gmra.mxu0 %vm191_vm1, %v1719_v34  ;;  %1723 = vmatmul.msk.f32.vlgmr.msra.gmra.mxu1 %vm191_vm1, %v1719_v34 }
  0x9f   : > { %1728 = vmatpush.msk.msrb.mxu0 %vm195_vm0, %v2023_v7  ;;  %1730 = vmatpush.msk.msrb.mxu1 %vm195_vm0, %v2026_v8  ;;  %v1767_v8 = vld [vmem:[%s2814_s1 + $0x38] sm:$0xff] }
  0xa0   : > { %1744 = vmatpush.msk.msra.mxu3 %vm195_vm0, %v439_v42 }
  0xa1   : > { %1737 = vmatpush.msk.msra.mxu0 %vm195_vm0, %v350_v36  ;;  %1745 = vmatmul.msk.f32.vlgmr.msra.gmra.mxu3 %vm191_vm1, %v1739_v43 }
  0xa3   : > { %v2081_v44 = vpop.permute.xlu0 %963  ;;  %v346_v45 = vpop.permute.xlu1 %345 }
  0xa4   : > { %v352_v46 = vsel %vm351_vm2, %v346_v45, %v348_v32  ;;  %v528_v47 = vpop.permute.xlu2 %527  ;;  %vm1209_vm2 = vcmask 1044484  }
  0xa5   : > { %1733 = vmatpush.msk.msrb.mxu2 %vm195_vm0, %v352_v46 }
  0xa6   : > { %1729 = vmatmul.msk.f32.vlgmr.msrb.gmra.mxu0 %vm191_vm1, %v171_v31  ;;  %1731 = vmatmul.msk.f32.vlgmr.msrb.gmra.mxu1 %vm191_vm1, %v171_v31 }
  0xa7   : > { %1734 = vmatmul.msk.f32.vlgmr.msrb.gmra.mxu2 %vm191_vm1, %v1732_v38 }
  0xab   : > { %v437_v48 = vpop.permute.xlu1 %436  ;;  %v435_v49 = vpop.permute.xlu0 %434 }
  0xac   : > { %v442_v50 = vsel %vm440_vm4, %v437_v48, %v439_v42  ;;  %v441_v51 = vsel %vm440_vm4, %v435_v49, %v437_v48  ;;  %v617_v52 = vpop.permute.xlu2 %616  ;;  %vm1269_vm4 = vcmask 15360  }
  0xad   : > { %1740 = vmatpush.msk.msra.mxu1 %vm195_vm0, %v441_v51  ;;  %1742 = vmatpush.msk.msra.mxu2 %vm195_vm0, %v442_v50  ;;  %v294_v17 = vpop.f32.mrf.mxu3 }
  0xae   : > { %1738 = vmatmul.msk.f32.vlgmr.msra.gmra.mxu0 %vm191_vm1, %v1732_v38  ;;  %1741 = vmatmul.msk.f32.vlgmr.msra.gmra.mxu1 %vm191_vm1, %v1739_v43 }
  0xaf   : > { %1743 = vmatmul.msk.f32.vlgmr.msra.gmra.mxu2 %vm191_vm1, %v1739_v43 }
  0xb0   : > { %1751 = vmatpush.msk.msrb.mxu2 %vm195_vm0, %v528_v47 }
  0xb3   : > { %v526_v53 = vpop.permute.xlu1 %525  ;;  %v524_v54 = vpop.permute.xlu0 %523 }
  0xb4   : > { %v531_v56 = vsel %vm529_vm5, %v526_v53, %v528_v47  ;;  %v530_v57 = vsel %vm529_vm5, %v524_v54, %v526_v53  ;;  %v706_v58 = vpop.permute.xlu2 %705 }
  0xb5   : > { %1747 = vmatpush.msk.msrb.mxu0 %vm195_vm0, %v530_v57  ;;  %1749 = vmatpush.msk.msrb.mxu1 %vm195_vm0, %v531_v56 }
  0xb6   : > { %1748 = vmatmul.msk.f32.vlgmr.msrb.gmra.mxu0 %vm191_vm1, %v1746_v55  ;;  %1750 = vmatmul.msk.f32.vlgmr.msrb.gmra.mxu1 %vm191_vm1, %v1746_v55 }
  0xb7   : > { %1752 = vmatmul.msk.f32.vlgmr.msrb.gmra.mxu2 %vm191_vm1, %v1746_v55  ;;  %1758 = vmatpush.msk.msra.mxu1 %vm195_vm0, %v617_v52 }
  0xbb   : > { %v615_v59 = vpop.permute.xlu1 %614  ;;  %v613_v60 = vpop.permute.xlu0 %612 }
  0xbc   : > { %v620_v62 = vsel %vm618_vm6, %v615_v59, %v617_v52  ;;  %v619_v63 = vsel %vm618_vm6, %v613_v60, %v615_v59  ;;  %v795_v0 = vpop.permute.xlu2 %794 }
  0xbd   : > { %1754 = vmatpush.msk.msrb.mxu3 %vm195_vm0, %v619_v63  ;;  %1756 = vmatpush.msk.msra.mxu0 %vm195_vm0, %v620_v62 }
  0xbe   : > { %1755 = vmatmul.msk.f32.vlgmr.msrb.gmra.mxu3 %vm191_vm1, %v1753_v61  ;;  %1757 = vmatmul.msk.f32.vlgmr.msra.gmra.mxu0 %vm191_vm1, %v1753_v61 }
  0xbf   : > { %1759 = vmatmul.msk.f32.vlgmr.msra.gmra.mxu1 %vm191_vm1, %v1753_v61  ;;  %1765 = vmatpush.msk.msrb.mxu0 %vm195_vm0, %v706_v58 }
  0xc3   : > { %v704_v1 = vpop.permute.xlu1 %703  ;;  %v702_v2 = vpop.permute.xlu0 %701 }
  0xc4   : > { %v709_v4 = vsel %vm707_vm7, %v704_v1, %v706_v58  ;;  %v708_v5 = vsel %vm707_vm7, %v702_v2, %v704_v1  ;;  %v884_v11 = vpop.permute.xlu2 %883 }
  0xc5   : > { %1761 = vmatpush.msk.msra.mxu2 %vm195_vm0, %v708_v5  ;;  %1763 = vmatpush.msk.msra.mxu3 %vm195_vm0, %v709_v4 }
  0xc6   : > { %1762 = vmatmul.msk.f32.vlgmr.msra.gmra.mxu2 %vm191_vm1, %v1760_v3  ;;  %1764 = vmatmul.msk.f32.vlgmr.msra.gmra.mxu3 %vm191_vm1, %v1760_v3 }
  0xc7   : > { %1766 = vmatmul.msk.f32.vlgmr.msrb.gmra.mxu0 %vm191_vm1, %v1760_v3  ;;  %1772 = vmatpush.msk.msrb.mxu3 %vm195_vm0, %v795_v0 }
  0xcb   : > { %v793_v6 = vpop.permute.xlu1 %792  ;;  %v791_v7 = vpop.permute.xlu0 %790 }
  0xcc   : > { %v798_v9 = vsel %vm796_vm8, %v793_v6, %v795_v0  ;;  %v797_v10 = vsel %vm796_vm8, %v791_v7, %v793_v6 }
  0xcd   : > { %1768 = vmatpush.msk.msrb.mxu1 %vm195_vm0, %v797_v10  ;;  %1770 = vmatpush.msk.msrb.mxu2 %vm195_vm0, %v798_v9 }
  0xce   : > { %1769 = vmatmul.msk.f32.vlgmr.msrb.gmra.mxu1 %vm191_vm1, %v1767_v8  ;;  %1771 = vmatmul.msk.f32.vlgmr.msrb.gmra.mxu2 %vm191_vm1, %v1767_v8 }
  0xcf   : > { %1773 = vmatmul.msk.f32.vlgmr.msrb.gmra.mxu3 %vm191_vm1, %v1767_v8  ;;  %1779 = vmatpush.msk.msra.mxu2 %vm195_vm0, %v884_v11 }
  0xd3   : > { %v882_v12 = vpop.permute.xlu1 %881  ;;  %v880_v13 = vpop.permute.xlu0 %879 }
  0xd4   : > { %v887_v15 = vsel %vm885_vm9, %v882_v12, %v884_v11  ;;  %v886_v16 = vsel %vm885_vm9, %v880_v13, %v882_v12 }
  0xd5   : > { %1775 = vmatpush.msk.msra.mxu0 %vm195_vm0, %v886_v16  ;;  %1777 = vmatpush.msk.msra.mxu1 %vm195_vm0, %v887_v15  ;;  %vm1215_vm0 = vcmask 1046534  }
  0xd6   : > { %1776 = vmatmul.msk.f32.vlgmr.msra.gmra.mxu0 %vm191_vm1, %v1774_v14  ;;  %1778 = vmatmul.msk.f32.vlgmr.msra.gmra.mxu1 %vm191_vm1, %v1774_v14 }
  0xd7   : > { %1780 = vmatmul.msk.f32.vlgmr.msra.gmra.mxu2 %vm191_vm1, %v1774_v14 }
 0x119   : > { %v259_v20 = vpop.f32.mrf.mxu2 }
 0x11a   : > { %v400_v21 = vpop.f32.mrf.mxu3 }
 0x11b   : > { %v219_v18 = vpop.f32.mrf.mxu0  ;;  %v239_v19 = vpop.f32.mrf.mxu1 }
 0x11c   : > { %v295_v40 = vadd.f32 %v294_v17, %v219_v18 }
 0x123   : > { %v314_v22 = vpop.f32.mrf.mxu0  ;;  %v334_v23 = vpop.f32.mrf.mxu1 }
 0x124   : > { %v335_v24 = vadd.f32 %v334_v23, %v259_v20  ;;  %v509_v26 = vpop.f32.mrf.mxu3  ;;  %v315_v39 = vadd.f32 %v314_v22, %v239_v19 }
 0x126   : > { %v424_v46 = vadd.f32 %v400_v21, %v315_v39 }
 0x12a   : > { %v380_v25 = vpop.f32.mrf.mxu2 }
 0x12b   : > { %v420_v27 = vpop.f32.mrf.mxu0  ;;  %v469_v28 = vpop.f32.mrf.mxu1  ;;  %v423_v42 = vadd.f32 %v380_v25, %v295_v40 }
 0x12c   : > { %v425_v29 = vadd.f32 %v420_v27, %v335_v24 }
 0x12d   : > { %v512_v47 = vadd.f32 %v469_v28, %v423_v42 }
 0x12e   : > { %v514_v30 = vadd.f32 %v509_v26, %v425_v29 }
 0x132   : > { %v489_v31 = vpop.f32.mrf.mxu2 }
 0x133   : > { %v558_v32 = vpop.f32.mrf.mxu0  ;;  %v578_v33 = vpop.f32.mrf.mxu1  ;;  %v513_v48 = vadd.f32 %v489_v31, %v424_v46 }
 0x134   : > { %v601_v50 = vadd.f32 %v558_v32, %v512_v47 }
 0x135   : > { %v602_v52 = vadd.f32 %v578_v33, %v513_v48 }
 0x13a   : > { %v598_v34 = vpop.f32.mrf.mxu2 }
 0x13b   : > { %v667_v35 = vpop.f32.mrf.mxu0  ;;  %v603_v36 = vadd.f32 %v598_v34, %v514_v30 }
 0x13c   : > { %v687_v37 = vpop.f32.mrf.mxu1  ;;  %v691_v55 = vadd.f32 %v667_v35, %v602_v52 }
 0x13d   : > { %v692_v38 = vadd.f32 %v687_v37, %v603_v36 }
 0x141   : > { %v647_v41 = vpop.f32.mrf.mxu3 }
 0x142   : > { %v690_v53 = vadd.f32 %v647_v41, %v601_v50 }
 0x144   : > { %v776_v43 = vpop.f32.mrf.mxu0 }
 0x145   : > { %v781_v45 = vadd.f32 %v776_v43, %v692_v38 }
 0x149   : > { %v736_v49 = vpop.f32.mrf.mxu2  ;;  %v756_v54 = vpop.f32.mrf.mxu3 }
 0x14a   : > { %v779_v56 = vadd.f32 %v736_v49, %v690_v53  ;;  %v780_v57 = vadd.f32 %v756_v54, %v691_v55 }
 0x14b   : > { %v825_v51 = vpop.f32.mrf.mxu1 }
 0x14c   : > { %v868_v59 = vadd.f32 %v825_v51, %v779_v56 }
 0x151   : > { %v845_v58 = vpop.f32.mrf.mxu2 }
 0x152   : > { %v869_v60 = vadd.f32 %v845_v58, %v780_v57  ;;  %v865_v1 = vpop.f32.mrf.mxu3 }
 0x153   : > { %v914_v61 = vpop.f32.mrf.mxu0  ;;  %v934_v62 = vpop.f32.mrf.mxu1  ;;  %v870_v5 = vadd.f32 %v865_v1, %v781_v45 }
 0x154   : > { %v957_v63 = vadd.f32 %v914_v61, %v868_v59  ;;  %v958_v0 = vadd.f32 %v934_v62, %v869_v60 }
 0x156   : > { %v966_v2 = vadd.f32 %v2081_v44, %v957_v63  ;;  %v967_v4 = vadd.f32 %v2081_v44, %v958_v0 }
 0x158   : > { %v2142_v3 = vmax.f32 %v966_v2, 0.0  ;;  %v2155_v13 = vmax.f32 %v967_v4, 0.0 }
 0x15a   : > { %988 = vst.msk [vmem:[%s2145_s25] sm:$0x1] %vm987_vm10, %v2142_v3  ;;  %v954_v6 = vpop.f32.mrf.mxu2  ;;  %v996_v7 = vperm.slane %v2142_v3, 0  ;;  %v973_v8 = vrot.slane %v2142_v3, 1  ;;  %v976_v9 = vrot.slane %v2142_v3, 4  ;;  %v974_v11 = vrot.slane %v2142_v3, 2 }
 0x15b   : > { %v959_v10 = vadd.f32 %v954_v6, %v870_v5  ;;  %v975_v12 = vrot.slane %v2142_v3, 3  ;;  %v979_v14 = vrot.slane %v2142_v3, 7  ;;  %v977_v16 = vrot.slane %v2142_v3, 5 }
 0x15c   : > { %1100 = vrot.lane.b32.xlu2 %v996_v7, %s1925_s26  ;;  %1068 = vrot.lane.b32.xlu0 %v996_v7, %s1926_s27  ;;  %989 = vst.msk [vmem:[%s2145_s25 + $0x10] sm:$0x1] %vm987_vm10, %v973_v8  ;;  %v978_v17 = vrot.slane %v2142_v3, 6  ;;  %v2188_v19 = vperm.slane %v2155_v13, 0  ;;  %v997_v37 = vperm.slane %v973_v8, 0  ;;  %v1000_v38 = vperm.slane %v976_v9, 0 }
 0x15d   : > { %v968_v15 = vadd.f32 %v2081_v44, %v959_v10  ;;  %1004 = vrot.lane.b32.xlu1 %v996_v7, %s1919_s6  ;;  %992 = vst.msk [vmem:[%s2145_s25 + $0x40] sm:$0x1] %vm987_vm10, %v976_v9  ;;  %v2181_v44 = vrot.slane %v2155_v13, 7  ;;  %v999_v39 = vperm.slane %v975_v12, 0  ;;  %v998_v40 = vperm.slane %v974_v11, 0 }
 0x15e   : > { %990 = vst.msk [vmem:[%s2145_s25 + $0x20] sm:$0x1] %vm987_vm10, %v974_v11  ;;  %v2296_v41 = vperm.slane %v979_v14, 0  ;;  %v1002_v42 = vperm.slane %v978_v17, 0  ;;  %v2298_v43 = vperm.slane %v977_v16, 0  ;;  %v1296_v56 = vrot.slane %v2155_v13, 3 }
 0x15f   : > { %991 = vst.msk [vmem:[%s2145_s25 + $0x30] sm:$0x1] %vm987_vm10, %v975_v12  ;;  %v2183_v18 = vmax.f32 %v968_v15, 0.0  ;;  %v2195_v20 = vsel %vm1198_vm11, %v2142_v3, %v2181_v44  ;;  %v2200_v21 = vsel %vm1203_vm12, %v2142_v3, %v2181_v44  ;;  %v2205_v22 = vsel %vm1206_vm13, %v2142_v3, %v2181_v44 }
 0x160   : > { %995 = vst.msk [vmem:[%s2145_s25 + $0x70] sm:$0x1] %vm987_vm10, %v979_v14  ;;  %v2213_v23 = vsel %vm1200_vm14, %v2142_v3, %v2181_v44  ;;  %v2218_v24 = vsel %vm1212_vm15, %v2142_v3, %v2181_v44  ;;  %v2223_v25 = vsel %vm1215_vm0, %v2142_v3, %v2181_v44  ;;  %v2232_v27 = vsel %vm1209_vm2, %v2142_v3, %v2181_v44 }
 0x161   : > { %993 = vst.msk [vmem:[%s2145_s25 + $0x50] sm:$0x1] %vm987_vm10, %v977_v16  ;;  %v2226_v26 = vrot.slane %v2183_v18, 7  ;;  %v2236_v28 = vsel %vm1218_vm3, %v2181_v44, %v2142_v3  ;;  %v2371_v58 = vperm.slane %v1296_v56, 0  ;;  %v1299_v61 = vrot.slane %v2155_v13, 6 }
 0x162   : > { %994 = vst.msk [vmem:[%s2145_s25 + $0x60] sm:$0x1] %vm987_vm10, %v978_v17  ;;  %v1295_v62 = vrot.slane %v2155_v13, 2  ;;  %v1294_v0 = vrot.slane %v2155_v13, 1  ;;  %v1298_v6 = vrot.slane %v2155_v13, 5  ;;  %v1297_v8 = vrot.slane %v2155_v13, 4 }
 0x163   : > { %v2241_v29 = vsel %vm1198_vm11, %v2155_v13, %v2226_v26  ;;  %v2246_v30 = vsel %vm1200_vm14, %v2155_v13, %v2226_v26  ;;  %v2251_v31 = vsel %vm1206_vm13, %v2155_v13, %v2226_v26  ;;  %v2260_v32 = vsel %vm1209_vm2, %v2155_v13, %v2226_v26 }
 0x164   : > { %1340 = vrot.lane.b32.xlu2 %v2188_v19, %s1927_s28  ;;  %1164 = vrot.lane.b32.xlu0 %v996_v7, %s1928_s29  ;;  %v2265_v33 = vsel %vm1203_vm12, %v2155_v13, %v2226_v26  ;;  %v2270_v34 = vsel %vm1215_vm0, %v2155_v13, %v2226_v26  ;;  %v2275_v35 = vsel %vm1218_vm3, %v2226_v26, %v2155_v13  ;;  %v2388_v1 = vperm.slane %v1299_v61, 0 }
 0x165   : > { %1036 = vrot.lane.b32.xlu1 %v996_v7, %s1922_s9  ;;  %v2280_v36 = vsel %vm1212_vm15, %v2155_v13, %v2226_v26  ;;  %v2390_v2 = vperm.slane %v1295_v62, 0  ;;  %v2392_v3 = vperm.slane %v1294_v0, 0  ;;  %v2408_v9 = vperm.slane %v1298_v6, 0 }
 0x166   : > { %v2410_v10 = vperm.slane %v1297_v8, 0  ;;  %v2425_v14 = vperm.slane %v2181_v44, 0  ;;  %v1205_v62 = vrot.slane %v2200_v21, 2  ;;  %v1208_v6 = vrot.slane %v2205_v22, 3 }
 0x168   : > { %v1225_v0 = vperm.slane %v1205_v62, 0 }
 0x16c   : > { %1436 = vrot.lane.b32.xlu2 %v2188_v19, %s1929_s30  ;;  %1308 = vrot.lane.b32.xlu0 %v2188_v19, %s1930_s4 }
 0x16d   : > { %1132 = vrot.lane.b32.xlu1 %v996_v7, %s1931_s5 }
 0x174   : > { %1404 = vrot.lane.b32.xlu0 %v2188_v19, %s1932_s7  ;;  %1006 = vrot.lane.b32.xlu2 %v997_v37, %s1919_s6 }
 0x175   : > { %1372 = vrot.lane.b32.xlu1 %v2188_v19, %s1933_s8 }
 0x17c   : > { %1012 = vrot.lane.b32.xlu0 %v1000_v38, %s1919_s6  ;;  %1010 = vrot.lane.b32.xlu2 %v999_v39, %s1919_s6 }
 0x17d   : > { %1008 = vrot.lane.b32.xlu1 %v998_v40, %s1919_s6 }
 0x184   : > { %1018 = vrot.lane.b32.xlu0 %v2296_v41, %s1919_s6  ;;  %1016 = vrot.lane.b32.xlu2 %v1002_v42, %s1919_s6 }
 0x185   : > { %1014 = vrot.lane.b32.xlu1 %v2298_v43, %s1919_s6  ;;  %s1934_s6 = smov 2  }
 0x18c   : > { %1040 = vrot.lane.b32.xlu0 %v998_v40, %s1922_s9  ;;  %1038 = vrot.lane.b32.xlu2 %v997_v37, %s1922_s9 }
 0x18d   : > { %1042 = vrot.lane.b32.xlu1 %v999_v39, %s1922_s9 }
 0x194   : > { %1046 = vrot.lane.b32.xlu0 %v2298_v43, %s1922_s9  ;;  %1044 = vrot.lane.b32.xlu2 %v1000_v38, %s1922_s9 }
 0x195   : > { %1048 = vrot.lane.b32.xlu1 %v1002_v42, %s1922_s9 }
 0x19c   : > { %1074 = vrot.lane.b32.xlu0 %v999_v39, %s1926_s27  ;;  %1050 = vrot.lane.b32.xlu2 %v2296_v41, %s1922_s9  ;;  %s1935_s9 = smov 22  }
 0x19d   : > { %1070 = vrot.lane.b32.xlu1 %v997_v37, %s1926_s27 }
 0x1a4   : > { %1080 = vrot.lane.b32.xlu0 %v1002_v42, %s1926_s27  ;;  %1072 = vrot.lane.b32.xlu2 %v998_v40, %s1926_s27 }
 0x1a5   : > { %1076 = vrot.lane.b32.xlu1 %v1000_v38, %s1926_s27 }
 0x1ac   : > { %1102 = vrot.lane.b32.xlu0 %v997_v37, %s1925_s26  ;;  %1078 = vrot.lane.b32.xlu2 %v2298_v43, %s1926_s27 }
 0x1ad   : > { %1082 = vrot.lane.b32.xlu1 %v2296_v41, %s1926_s27  ;;  %s1648_s27 = sshll.u32 %s2145_s25, 4  ;;  %s1649_s27 = int_to_ptr.vmem [resolvable:$true] %s1648_s27 }
 0x1b4   : > { %1108 = vrot.lane.b32.xlu0 %v1000_v38, %s1925_s26  ;;  %1106 = vrot.lane.b32.xlu2 %v999_v39, %s1925_s26 }
 0x1b5   : > { %1104 = vrot.lane.b32.xlu1 %v998_v40, %s1925_s26 }
 0x1b6   : > { %v1101_v45 = vpop.permute.xlu2 %1100 }
 0x1b7   : > { %1124 = vst.msk [vmem:[%s2145_s25 + $0x4] sm:$0x1] %vm987_vm10, %v1101_v45 }
 0x1bc   : > { %1114 = vrot.lane.b32.xlu0 %v2296_v41, %s1925_s26  ;;  %1112 = vrot.lane.b32.xlu2 %v1002_v42, %s1925_s26 }
 0x1bd   : > { %1110 = vrot.lane.b32.xlu1 %v2298_v43, %s1925_s26  ;;  %s1647_s26 = scalar_lea.hbm %s2816_s3, %s1786_s17 }
 0x1be   : > { %v1341_v46 = vpop.permute.xlu2 %1340 }
 0x1bf   : > { %1364 = vst.msk [vmem:[%s2145_s25 + $0x9] sm:$0x1] %vm987_vm10, %v1341_v46 }
 0x1c4   : > { %1136 = vrot.lane.b32.xlu0 %v998_v40, %s1931_s5  ;;  %1134 = vrot.lane.b32.xlu2 %v997_v37, %s1931_s5 }
 0x1c5   : > { %1138 = vrot.lane.b32.xlu1 %v999_v39, %s1931_s5 }
 0x1c6   : > { %v1437_v47 = vpop.permute.xlu2 %1436 }
 0x1c7   : > { %1460 = vst.msk [vmem:[%s2145_s25 + $0xc] sm:$0x1] %vm987_vm10, %v1437_v47 }
 0x1cc   : > { %1142 = vrot.lane.b32.xlu0 %v2298_v43, %s1931_s5  ;;  %1140 = vrot.lane.b32.xlu2 %v1000_v38, %s1931_s5 }
 0x1cd   : > { %1144 = vrot.lane.b32.xlu1 %v1002_v42, %s1931_s5 }
 0x1ce   : > { %v1069_v48 = vpop.permute.xlu0 %1068  ;;  %v1007_v49 = vpop.permute.xlu2 %1006 }
 0x1cf   : > { %1092 = vst.msk [vmem:[%s2145_s25 + $0x3] sm:$0x1] %vm987_vm10, %v1069_v48  ;;  %v1005_v50 = vpop.permute.xlu1 %1004 }
 0x1d0   : > { %1028 = vst.msk [vmem:[%s2145_s25 + $0x1] sm:$0x1] %vm987_vm10, %v1005_v50 }
 0x1d1   : > { %1029 = vst.msk [vmem:[%s2145_s25 + $0x11] sm:$0x1] %vm987_vm10, %v1007_v49 }
 0x1d4   : > { %1170 = vrot.lane.b32.xlu0 %v999_v39, %s1928_s29  ;;  %1146 = vrot.lane.b32.xlu2 %v2296_v41, %s1931_s5 }
 0x1d5   : > { %1166 = vrot.lane.b32.xlu1 %v997_v37, %s1928_s29 }
 0x1d6   : > { %v1165_v51 = vpop.permute.xlu0 %1164  ;;  %v1011_v52 = vpop.permute.xlu2 %1010 }
 0x1d7   : > { %1188 = vst.msk [vmem:[%s2145_s25 + $0x6] sm:$0x1] %vm987_vm10, %v1165_v51  ;;  %v1037_v53 = vpop.permute.xlu1 %1036 }
 0x1d8   : > { %1060 = vst.msk [vmem:[%s2145_s25 + $0x2] sm:$0x1] %vm987_vm10, %v1037_v53 }
 0x1d9   : > { %1031 = vst.msk [vmem:[%s2145_s25 + $0x31] sm:$0x1] %vm987_vm10, %v1011_v52 }
 0x1dc   : > { %1176 = vrot.lane.b32.xlu0 %v1002_v42, %s1928_s29  ;;  %1168 = vrot.lane.b32.xlu2 %v998_v40, %s1928_s29 }
 0x1dd   : > { %1172 = vrot.lane.b32.xlu1 %v1000_v38, %s1928_s29 }
 0x1de   : > { %v1309_v54 = vpop.permute.xlu0 %1308  ;;  %v1017_v55 = vpop.permute.xlu2 %1016 }
 0x1df   : > { %1332 = vst.msk [vmem:[%s2145_s25 + $0x8] sm:$0x1] %vm987_vm10, %v1309_v54  ;;  %v1133_v57 = vpop.permute.xlu1 %1132 }
 0x1e0   : > { %1156 = vst.msk [vmem:[%s2145_s25 + $0x5] sm:$0x1] %vm987_vm10, %v1133_v57 }
 0x1e1   : > { %1034 = vst.msk [vmem:[%s2145_s25 + $0x61] sm:$0x1] %vm987_vm10, %v1017_v55 }
 0x1e4   : > { %1314 = vrot.lane.b32.xlu0 %v2371_v58, %s1930_s4  ;;  %1174 = vrot.lane.b32.xlu2 %v2298_v43, %s1928_s29 }
 0x1e5   : > { %1178 = vrot.lane.b32.xlu1 %v2296_v41, %s1928_s29  ;;  %s1636_s29 = scalar_lea.sflag [#allocation3], %s161_s20 }
 0x1e6   : > { %v1405_v59 = vpop.permute.xlu0 %1404  ;;  %v1039_v60 = vpop.permute.xlu2 %1038 }
 0x1e7   : > { %1428 = vst.msk [vmem:[%s2145_s25 + $0xb] sm:$0x1] %vm987_vm10, %v1405_v59  ;;  %v1373_v63 = vpop.permute.xlu1 %1372  ;;  %v1222_v59 = vperm.slane %v2195_v20, 1 }
 0x1e8   : > { %1396 = vst.msk [vmem:[%s2145_s25 + $0xa] sm:$0x1] %vm987_vm10, %v1373_v63 }
 0x1e9   : > { %1061 = vst.msk [vmem:[%s2145_s25 + $0x12] sm:$0x1] %vm987_vm10, %v1039_v60 }
 0x1ec   : > { %1320 = vrot.lane.b32.xlu0 %v2388_v1, %s1930_s4  ;;  %1312 = vrot.lane.b32.xlu2 %v2390_v2, %s1930_s4 }
 0x1ed   : > { %1310 = vrot.lane.b32.xlu1 %v2392_v3, %s1930_s4 }
 0x1ee   : > { %v1013_v4 = vpop.permute.xlu0 %1012  ;;  %v1045_v5 = vpop.permute.xlu2 %1044 }
 0x1ef   : > { %1032 = vst.msk [vmem:[%s2145_s25 + $0x41] sm:$0x1] %vm987_vm10, %v1013_v4  ;;  %v1009_v7 = vpop.permute.xlu1 %1008  ;;  %v1221_v4 = vperm.slane %v2195_v20, 0  ;;  %v1228_v20 = vperm.slane %v1208_v6, 1 }
 0x1f0   : > { %1030 = vst.msk [vmem:[%s2145_s25 + $0x21] sm:$0x1] %vm987_vm10, %v1009_v7  ;;  %v1202_v7 = vrot.slane %v2213_v23, 1 }
 0x1f1   : > { %1064 = vst.msk [vmem:[%s2145_s25 + $0x42] sm:$0x1] %vm987_vm10, %v1045_v5 }
 0x1f4   : > { %1342 = vrot.lane.b32.xlu0 %v2392_v3, %s1927_s28  ;;  %1318 = vrot.lane.b32.xlu2 %v2408_v9, %s1930_s4 }
 0x1f5   : > { %1316 = vrot.lane.b32.xlu1 %v2410_v10, %s1930_s4 }
 0x1f6   : > { %v1019_v11 = vpop.permute.xlu0 %1018  ;;  %v1051_v12 = vpop.permute.xlu2 %1050 }
 0x1f7   : > { %1035 = vst.msk [vmem:[%s2145_s25 + $0x71] sm:$0x1] %vm987_vm10, %v1019_v11  ;;  %v1015_v13 = vpop.permute.xlu1 %1014  ;;  %v1224_v11 = vperm.slane %v1202_v7, 1 }
 0x1f8   : > { %1033 = vst.msk [vmem:[%s2145_s25 + $0x51] sm:$0x1] %vm987_vm10, %v1015_v13  ;;  %v1214_v13 = vrot.slane %v2218_v24, 5 }
 0x1f9   : > { %1067 = vst.msk [vmem:[%s2145_s25 + $0x72] sm:$0x1] %vm987_vm10, %v1051_v12  ;;  %v1223_v12 = vperm.slane %v1202_v7, 0 }
 0x1fc   : > { %1348 = vrot.lane.b32.xlu0 %v2410_v10, %s1927_s28  ;;  %1346 = vrot.lane.b32.xlu2 %v2371_v58, %s1927_s28 }
 0x1fd   : > { %1322 = vrot.lane.b32.xlu1 %v2425_v14, %s1930_s4 }
 0x1fe   : > { %v1041_v15 = vpop.permute.xlu0 %1040  ;;  %v1073_v16 = vpop.permute.xlu2 %1072 }
 0x1ff   : > { %1062 = vst.msk [vmem:[%s2145_s25 + $0x22] sm:$0x1] %vm987_vm10, %v1041_v15  ;;  %v1043_v17 = vpop.permute.xlu1 %1042 }
 0x200   : > { %1063 = vst.msk [vmem:[%s2145_s25 + $0x32] sm:$0x1] %vm987_vm10, %v1043_v17  ;;  %v1227_v17 = vperm.slane %v1208_v6, 0 }
 0x201   : > { %1094 = vst.msk [vmem:[%s2145_s25 + $0x23] sm:$0x1] %vm987_vm10, %v1073_v16  ;;  %v1231_v16 = vperm.slane %v1214_v13, 0 }
 0x204   : > { %1354 = vrot.lane.b32.xlu0 %v2425_v14, %s1927_s28  ;;  %1352 = vrot.lane.b32.xlu2 %v2388_v1, %s1927_s28 }
 0x205   : > { %1344 = vrot.lane.b32.xlu1 %v2390_v2, %s1927_s28 }
 0x206   : > { %v1047_v44 = vpop.permute.xlu0 %1046  ;;  %v1079_v37 = vpop.permute.xlu2 %1078 }
 0x207   : > { %1065 = vst.msk [vmem:[%s2145_s25 + $0x52] sm:$0x1] %vm987_vm10, %v1047_v44  ;;  %v1049_v38 = vpop.permute.xlu1 %1048  ;;  %v1226_v44 = vperm.slane %v1205_v62, 1 }
 0x208   : > { %1066 = vst.msk [vmem:[%s2145_s25 + $0x62] sm:$0x1] %vm987_vm10, %v1049_v38  ;;  %v1217_v38 = vrot.slane %v2223_v25, 6 }
 0x209   : > { %1097 = vst.msk [vmem:[%s2145_s25 + $0x53] sm:$0x1] %vm987_vm10, %v1079_v37 }
 0x20c   : > { %1376 = vrot.lane.b32.xlu0 %v2390_v2, %s1933_s8  ;;  %1374 = vrot.lane.b32.xlu2 %v2392_v3, %s1933_s8 }
 0x20d   : > { %1350 = vrot.lane.b32.xlu1 %v2408_v9, %s1927_s28  ;;  %s1650_s28 = sshll.u32 %s1647_s26, 4  ;;  %s1651_s28 = int_to_ptr.hbm [resolvable:$true] %s1650_s28 }
 0x20e   : > { %v1075_v39 = vpop.permute.xlu0 %1074  ;;  %v1107_v40 = vpop.permute.xlu2 %1106 }
 0x20f   : > { %1095 = vst.msk [vmem:[%s2145_s25 + $0x33] sm:$0x1] %vm987_vm10, %v1075_v39  ;;  %v1071_v41 = vpop.permute.xlu1 %1070  ;;  %v1211_v39 = vrot.slane %v2232_v27, 4 }
 0x210   : > { %1093 = vst.msk [vmem:[%s2145_s25 + $0x13] sm:$0x1] %vm987_vm10, %v1071_v41  ;;  %v1234_v41 = vperm.slane %v1217_v38, 1 }
 0x211   : > { %1127 = vst.msk [vmem:[%s2145_s25 + $0x34] sm:$0x1] %vm987_vm10, %v1107_v40 }
 0x214   : > { %1382 = vrot.lane.b32.xlu0 %v2408_v9, %s1933_s8  ;;  %1380 = vrot.lane.b32.xlu2 %v2410_v10, %s1933_s8 }
 0x215   : > { %1378 = vrot.lane.b32.xlu1 %v2371_v58, %s1933_s8 }
 0x216   : > { %v1081_v42 = vpop.permute.xlu0 %1080  ;;  %v1113_v43 = vpop.permute.xlu2 %1112 }
 0x217   : > { %1098 = vst.msk [vmem:[%s2145_s25 + $0x63] sm:$0x1] %vm987_vm10, %v1081_v42  ;;  %v1077_v45 = vpop.permute.xlu1 %1076  ;;  %v1230_v42 = vperm.slane %v1211_v39, 1 }
 0x218   : > { %1096 = vst.msk [vmem:[%s2145_s25 + $0x43] sm:$0x1] %vm987_vm10, %v1077_v45 }
 0x219   : > { %1130 = vst.msk [vmem:[%s2145_s25 + $0x64] sm:$0x1] %vm987_vm10, %v1113_v43  ;;  %v1229_v43 = vperm.slane %v1211_v39, 0 }
 0x21c   : > { %1410 = vrot.lane.b32.xlu0 %v2371_v58, %s1932_s7  ;;  %1386 = vrot.lane.b32.xlu2 %v2425_v14, %s1933_s8 }
 0x21d   : > { %1384 = vrot.lane.b32.xlu1 %v2388_v1, %s1933_s8 }
 0x21e   : > { %v1103_v46 = vpop.permute.xlu0 %1102  ;;  %v1135_v47 = vpop.permute.xlu2 %1134 }
 0x21f   : > { %1125 = vst.msk [vmem:[%s2145_s25 + $0x14] sm:$0x1] %vm987_vm10, %v1103_v46  ;;  %v1083_v48 = vpop.permute.xlu1 %1082  ;;  %v1233_v46 = vperm.slane %v1217_v38, 0 }
 0x220   : > { %1099 = vst.msk [vmem:[%s2145_s25 + $0x73] sm:$0x1] %vm987_vm10, %v1083_v48 }
 0x221   : > { %1157 = vst.msk [vmem:[%s2145_s25 + $0x15] sm:$0x1] %vm987_vm10, %v1135_v47  ;;  %v1232_v47 = vperm.slane %v1214_v13, 1  ;;  %v1516_v13 = vrot.slane %v2275_v35, 7  ;;  %v1590_v35 = vrot.slane %v2183_v18, 2 }
 0x223   : > { %v1597_v39 = vperm.slane %v1590_v35, 0 }
 0x224   : > { %1416 = vrot.lane.b32.xlu0 %v2388_v1, %s1932_s7  ;;  %1408 = vrot.lane.b32.xlu2 %v2390_v2, %s1932_s7 }
 0x225   : > { %1406 = vrot.lane.b32.xlu1 %v2392_v3, %s1932_s7 }
 0x226   : > { %v1109_v49 = vpop.permute.xlu0 %1108  ;;  %v1141_v50 = vpop.permute.xlu2 %1140 }
 0x227   : > { %1128 = vst.msk [vmem:[%s2145_s25 + $0x44] sm:$0x1] %vm987_vm10, %v1109_v49  ;;  %v1105_v51 = vpop.permute.xlu1 %1104 }
 0x228   : > { %1126 = vst.msk [vmem:[%s2145_s25 + $0x24] sm:$0x1] %vm987_vm10, %v1105_v51 }
 0x229   : > { %1160 = vst.msk [vmem:[%s2145_s25 + $0x45] sm:$0x1] %vm987_vm10, %v1141_v50  ;;  %v1220_v50 = vrot.slane %v2236_v28, 7 }
 0x22c   : > { %1438 = vrot.lane.b32.xlu0 %v2392_v3, %s1929_s30  ;;  %1414 = vrot.lane.b32.xlu2 %v2408_v9, %s1932_s7 }
 0x22d   : > { %1412 = vrot.lane.b32.xlu1 %v2410_v10, %s1932_s7 }
 0x22e   : > { %v1115_v52 = vpop.permute.xlu0 %1114  ;;  %v1147_v53 = vpop.permute.xlu2 %1146 }
 0x22f   : > { %1131 = vst.msk [vmem:[%s2145_s25 + $0x74] sm:$0x1] %vm987_vm10, %v1115_v52  ;;  %v1111_v54 = vpop.permute.xlu1 %1110  ;;  %v1236_v52 = vperm.slane %v1220_v50, 1 }
 0x230   : > { %1129 = vst.msk [vmem:[%s2145_s25 + $0x54] sm:$0x1] %vm987_vm10, %v1111_v54 }
 0x231   : > { %1163 = vst.msk [vmem:[%s2145_s25 + $0x75] sm:$0x1] %vm987_vm10, %v1147_v53  ;;  %v1235_v53 = vperm.slane %v1220_v50, 0 }
 0x234   : > { %1444 = vrot.lane.b32.xlu0 %v2410_v10, %s1929_s30  ;;  %1442 = vrot.lane.b32.xlu2 %v2371_v58, %s1929_s30 }
 0x235   : > { %1418 = vrot.lane.b32.xlu1 %v2425_v14, %s1932_s7  ;;  %s1872_s7 = scalar_lea.hbm %s2816_s3, 256 }
 0x236   : > { %v1137_v55 = vpop.permute.xlu0 %1136  ;;  %v1169_v56 = vpop.permute.xlu2 %1168 }
 0x237   : > { %1158 = vst.msk [vmem:[%s2145_s25 + $0x25] sm:$0x1] %vm987_vm10, %v1137_v55  ;;  %v1139_v57 = vpop.permute.xlu1 %1138 }
 0x238   : > { %1159 = vst.msk [vmem:[%s2145_s25 + $0x35] sm:$0x1] %vm987_vm10, %v1139_v57 }
 0x239   : > { %1190 = vst.msk [vmem:[%s2145_s25 + $0x26] sm:$0x1] %vm987_vm10, %v1169_v56 }
 0x23c   : > { %1239 = vrot.lane.b32.xlu0 %v1222_v59, %s1934_s6  ;;  %1448 = vrot.lane.b32.xlu2 %v2388_v1, %s1929_s30  ;;  %v1504_v59 = vrot.slane %v2246_v30, 1  ;;  %v1508_v30 = vrot.slane %v2251_v31, 3 }
 0x23d   : > { %1440 = vrot.lane.b32.xlu1 %v2390_v2, %s1929_s30 }
 0x23e   : > { %v1143_v60 = vpop.permute.xlu0 %1142  ;;  %v1175_v61 = vpop.permute.xlu2 %1174 }
 0x23f   : > { %1161 = vst.msk [vmem:[%s2145_s25 + $0x55] sm:$0x1] %vm987_vm10, %v1143_v60  ;;  %v1145_v63 = vpop.permute.xlu1 %1144 }
 0x240   : > { %1162 = vst.msk [vmem:[%s2145_s25 + $0x65] sm:$0x1] %vm987_vm10, %v1145_v63  ;;  %v1523_v63 = vperm.slane %v1508_v30, 0 }
 0x241   : > { %1193 = vst.msk [vmem:[%s2145_s25 + $0x56] sm:$0x1] %vm987_vm10, %v1175_v61  ;;  %v1520_v61 = vperm.slane %v1504_v59, 1 }
 0x244   : > { %1245 = vrot.lane.b32.xlu0 %v1225_v0, %s1934_s6  ;;  %1237 = vrot.lane.b32.xlu2 %v1221_v4, %s1934_s6  ;;  %v1519_v0 = vperm.slane %v1504_v59, 0  ;;  %v1510_v4 = vrot.slane %v2260_v32, 4  ;;  %v1602_v59 = vperm.slane %v2226_v26, 0 }
 0x245   : > { %1446 = vrot.lane.b32.xlu1 %v2408_v9, %s1929_s30 }
 0x246   : > { %v1171_v21 = vpop.permute.xlu0 %1170  ;;  %v1313_v5 = vpop.permute.xlu2 %1312 }
 0x247   : > { %1191 = vst.msk [vmem:[%s2145_s25 + $0x36] sm:$0x1] %vm987_vm10, %v1171_v21  ;;  %v1167_v8 = vpop.permute.xlu1 %1166  ;;  %v1506_v21 = vrot.slane %v2265_v33, 2 }
 0x248   : > { %1189 = vst.msk [vmem:[%s2145_s25 + $0x16] sm:$0x1] %vm987_vm10, %v1167_v8  ;;  %v1514_v8 = vrot.slane %v2270_v34, 6 }
 0x249   : > { %1334 = vst.msk [vmem:[%s2145_s25 + $0x28] sm:$0x1] %vm987_vm10, %v1313_v5  ;;  %v1522_v6 = vperm.slane %v1506_v21, 1  ;;  %v1521_v7 = vperm.slane %v1506_v21, 0 }
 0x24c   : > { %1251 = vrot.lane.b32.xlu0 %v1228_v20, %s1934_s6  ;;  %1243 = vrot.lane.b32.xlu2 %v1224_v11, %s1934_s6  ;;  %v1529_v11 = vperm.slane %v1514_v8, 0 }
 0x24d   : > { %1241 = vrot.lane.b32.xlu1 %v1223_v12, %s1934_s6  ;;  %v1525_v12 = vperm.slane %v1510_v4, 0 }
 0x24e   : > { %v1177_v22 = vpop.permute.xlu0 %1176  ;;  %v1319_v23 = vpop.permute.xlu2 %1318 }
 0x24f   : > { %1194 = vst.msk [vmem:[%s2145_s25 + $0x66] sm:$0x1] %vm987_vm10, %v1177_v22  ;;  %v1173_v15 = vpop.permute.xlu1 %1172  ;;  %v1524_v22 = vperm.slane %v1508_v30, 1 }
 0x250   : > { %1192 = vst.msk [vmem:[%s2145_s25 + $0x46] sm:$0x1] %vm987_vm10, %v1173_v15  ;;  %v1512_v15 = vrot.slane %v2280_v36, 5 }
 0x251   : > { %1337 = vst.msk [vmem:[%s2145_s25 + $0x58] sm:$0x1] %vm987_vm10, %v1319_v23 }
 0x254   : > { %1257 = vrot.lane.b32.xlu0 %v1231_v16, %s1934_s6  ;;  %1249 = vrot.lane.b32.xlu2 %v1227_v17, %s1934_s6  ;;  %v1532_v17 = vperm.slane %v1516_v13, 1 }
 0x255   : > { %1247 = vrot.lane.b32.xlu1 %v1226_v44, %s1934_s6  ;;  %v1528_v44 = vperm.slane %v1512_v15, 1 }
 0x256   : > { %v1315_v37 = vpop.permute.xlu0 %1314  ;;  %v1347_v24 = vpop.permute.xlu2 %1346 }
 0x257   : > { %1335 = vst.msk [vmem:[%s2145_s25 + $0x38] sm:$0x1] %vm987_vm10, %v1315_v37  ;;  %v1179_v40 = vpop.permute.xlu1 %1178  ;;  %v1527_v37 = vperm.slane %v1512_v15, 0 }
 0x258   : > { %1195 = vst.msk [vmem:[%s2145_s25 + $0x76] sm:$0x1] %vm987_vm10, %v1179_v40  ;;  %v1531_v40 = vperm.slane %v1516_v13, 0 }
 0x259   : > { %1367 = vst.msk [vmem:[%s2145_s25 + $0x39] sm:$0x1] %vm987_vm10, %v1347_v24 }
 0x25c   : > { %1263 = vrot.lane.b32.xlu0 %v1234_v41, %s1934_s6  ;;  %1255 = vrot.lane.b32.xlu2 %v1230_v42, %s1934_s6  ;;  %v1530_v41 = vperm.slane %v1514_v8, 1 }
 0x25d   : > { %1253 = vrot.lane.b32.xlu1 %v1229_v43, %s1934_s6 }
 0x25e   : > { %v1321_v25 = vpop.permute.xlu0 %1320  ;;  %v1353_v27 = vpop.permute.xlu2 %1352 }
 0x25f   : > { %1338 = vst.msk [vmem:[%s2145_s25 + $0x68] sm:$0x1] %vm987_vm10, %v1321_v25  ;;  %v1311_v45 = vpop.permute.xlu1 %1310  ;;  %v1593_v25 = vrot.slane %v2183_v18, 5 }
 0x260   : > { %1333 = vst.msk [vmem:[%s2145_s25 + $0x18] sm:$0x1] %vm987_vm10, %v1311_v45 }
 0x261   : > { %1370 = vst.msk [vmem:[%s2145_s25 + $0x69] sm:$0x1] %vm987_vm10, %v1353_v27  ;;  %v1589_v27 = vrot.slane %v2183_v18, 1 }
 0x264   : > { %1450 = vrot.lane.b32.xlu0 %v2425_v14, %s1929_s30  ;;  %1261 = vrot.lane.b32.xlu2 %v1233_v46, %s1934_s6  ;;  %s1866_s30 = sshra.s32 %s1651_s28, 4  ;;  %s1867_s30 = int_to_ptr.hbm [resolvable:$true] %s1866_s30 }
 0x265   : > { %1259 = vrot.lane.b32.xlu1 %v1232_v47, %s1934_s6  ;;  %v1600_v47 = vperm.slane %v1593_v25, 0  ;;  %s1868_s4 = scalar_lea.hbm %s1867_s30, 128  ;;  %p1873_p0 = scmp.lt.s32.totalorder %s1867_s30, %s2816_s3 }
 0x266   : > { %v1343_v48 = vpop.permute.xlu0 %1342  ;;  %v1375_v49 = vpop.permute.xlu2 %1374  ;;  %p1869_p11 = scmp.ne.s32.totalorder %s1867_s30, %s1868_s4  ;;  %p1874_p1 = scmp.lt.s32.totalorder %s1872_s7, %s1868_s4 }
 0x267   : > { %1365 = vst.msk [vmem:[%s2145_s25 + $0x19] sm:$0x1] %vm987_vm10, %v1343_v48  ;;  %v1317_v51 = vpop.permute.xlu1 %1316  ;;  %v1596_v48 = vperm.slane %v1589_v27, 0 }
 0x268   : > { %1336 = vst.msk [vmem:[%s2145_s25 + $0x48] sm:$0x1] %vm987_vm10, %v1317_v51  ;;  %p1870_p12 = pnand %p1869_p11, %p1998_p5  ;;  %p1875_p2 = por %p1874_p1, %p1873_p0 }
 0x269   : > { %1397 = vst.msk [vmem:[%s2145_s25 + $0x1a] sm:$0x1] %vm987_vm10, %v1375_v49  ;;  %v1595_v49 = vperm.slane %v2183_v18, 0 }
 0x26a   : > { %p1871_p13 = pneg %p1870_p12 }
 0x26c   : > { %1472 = vrot.lane.b32.xlu0 %v2390_v2, %s1935_s9  ;;  %1267 = vrot.lane.b32.xlu2 %v1236_v52, %s1934_s6  ;;  %v1592_v52 = vrot.slane %v2183_v18, 4  ;;  %p1876_p3 = pnand %p1875_p2, %p1871_p13 }
 0x26d   : > { %1265 = vrot.lane.b32.xlu1 %v1235_v53, %s1934_s6 }
 0x26e   : > { %v1349_v28 = vpop.permute.xlu0 %1348  ;;  %v1381_v54 = vpop.permute.xlu2 %1380 }
 0x26f   : > { %1368 = vst.msk [vmem:[%s2145_s25 + $0x49] sm:$0x1] %vm987_vm10, %v1349_v28  ;;  %v1323_v55 = vpop.permute.xlu1 %1322  ;;  %v1591_v28 = vrot.slane %v2183_v18, 3 }
 0x270   : > { %1339 = vst.msk [vmem:[%s2145_s25 + $0x78] sm:$0x1] %vm987_vm10, %v1323_v55 }
 0x271   : > { %1400 = vst.msk [vmem:[%s2145_s25 + $0x4a] sm:$0x1] %vm987_vm10, %v1381_v54  ;;  %v1599_v54 = vperm.slane %v1592_v52, 0  ;;  %v1598_v55 = vperm.slane %v1591_v28, 0 }
 0x274   : > { %1478 = vrot.lane.b32.xlu0 %v2408_v9, %s1935_s9  ;;  %1470 = vrot.lane.b32.xlu2 %v2392_v3, %s1935_s9  ;;  %v1517_v9 = vperm.slane %v2241_v29, 0 }
 0x275   : > { %1468 = vrot.lane.b32.xlu1 %v2188_v19, %s1935_s9 }
 0x276   : > { %v1355_v2 = vpop.permute.xlu0 %1354  ;;  %v1387_v56 = vpop.permute.xlu2 %1386 }
 0x277   : > { %1371 = vst.msk [vmem:[%s2145_s25 + $0x79] sm:$0x1] %vm987_vm10, %v1355_v2  ;;  %v1345_v57 = vpop.permute.xlu1 %1344 }
 0x278   : > { %1366 = vst.msk [vmem:[%s2145_s25 + $0x29] sm:$0x1] %vm987_vm10, %v1345_v57 }
 0x279   : > { %1403 = vst.msk [vmem:[%s2145_s25 + $0x7a] sm:$0x1] %vm987_vm10, %v1387_v56 }
 0x27c   : > { %1533 = vrot.lane.b32.xlu0 %v1517_v9, %s1936_s10  ;;  %1476 = vrot.lane.b32.xlu2 %v2410_v10, %s1935_s9 }
 0x27d   : > { %1474 = vrot.lane.b32.xlu1 %v2371_v58, %s1935_s9 }
 0x27e   : > { %v1377_v19 = vpop.permute.xlu0 %1376  ;;  %v1409_v3 = vpop.permute.xlu2 %1408 }
 0x27f   : > { %1398 = vst.msk [vmem:[%s2145_s25 + $0x2a] sm:$0x1] %vm987_vm10, %v1377_v19  ;;  %v1351_v60 = vpop.permute.xlu1 %1350  ;;  %v1594_v19 = vrot.slane %v2183_v18, 6 }
 0x280   : > { %1369 = vst.msk [vmem:[%s2145_s25 + $0x59] sm:$0x1] %vm987_vm10, %v1351_v60 }
 0x281   : > { %1430 = vst.msk [vmem:[%s2145_s25 + $0x2b] sm:$0x1] %vm987_vm10, %v1409_v3  ;;  %v1601_v60 = vperm.slane %v1594_v19, 0 }
 0x284   : > { %1539 = vrot.lane.b32.xlu0 %v1520_v61, %s1936_s10  ;;  %1482 = vrot.lane.b32.xlu2 %v2425_v14, %s1935_s9  ;;  %v1518_v14 = vperm.slane %v2241_v29, 1  ;;  %v1526_v29 = vperm.slane %v1510_v4, 1 }
 0x285   : > { %1480 = vrot.lane.b32.xlu1 %v2388_v1, %s1935_s9 }
 0x286   : > { %v1383_v58 = vpop.permute.xlu0 %1382  ;;  %v1415_v10 = vpop.permute.xlu2 %1414 }
 0x287   : > { %1401 = vst.msk [vmem:[%s2145_s25 + $0x5a] sm:$0x1] %vm987_vm10, %v1383_v58  ;;  %v1379_v62 = vpop.permute.xlu1 %1378 }
 0x288   : > { %1399 = vst.msk [vmem:[%s2145_s25 + $0x3a] sm:$0x1] %vm987_vm10, %v1379_v62 }
 0x289   : > { %1433 = vst.msk [vmem:[%s2145_s25 + $0x5b] sm:$0x1] %vm987_vm10, %v1415_v10 }
 0x28c   : > { %1545 = vrot.lane.b32.xlu0 %v1523_v63, %s1936_s10  ;;  %1537 = vrot.lane.b32.xlu2 %v1519_v0, %s1936_s10 }
 0x28d   : > { %1535 = vrot.lane.b32.xlu1 %v1518_v14, %s1936_s10 }
 0x28e   : > { %v1411_v31 = vpop.permute.xlu0 %1410  ;;  %v1443_v1 = vpop.permute.xlu2 %1442 }
 0x28f   : > { %1431 = vst.msk [vmem:[%s2145_s25 + $0x3b] sm:$0x1] %vm987_vm10, %v1411_v31  ;;  %v1385_v5 = vpop.permute.xlu1 %1384 }
 0x290   : > { %1402 = vst.msk [vmem:[%s2145_s25 + $0x6a] sm:$0x1] %vm987_vm10, %v1385_v5 }
 0x291   : > { %1463 = vst.msk [vmem:[%s2145_s25 + $0x3c] sm:$0x1] %vm987_vm10, %v1443_v1 }
 0x294   : > { %1551 = vrot.lane.b32.xlu0 %v1526_v29, %s1936_s10  ;;  %1543 = vrot.lane.b32.xlu2 %v1522_v6, %s1936_s10 }
 0x295   : > { %1541 = vrot.lane.b32.xlu1 %v1521_v7, %s1936_s10 }
 0x296   : > { %v1417_v32 = vpop.permute.xlu0 %1416  ;;  %v1449_v33 = vpop.permute.xlu2 %1448 }
 0x297   : > { %1434 = vst.msk [vmem:[%s2145_s25 + $0x6b] sm:$0x1] %vm987_vm10, %v1417_v32  ;;  %v1407_v20 = vpop.permute.xlu1 %1406 }
 0x298   : > { %1429 = vst.msk [vmem:[%s2145_s25 + $0x1b] sm:$0x1] %vm987_vm10, %v1407_v20 }
 0x299   : > { %1466 = vst.msk [vmem:[%s2145_s25 + $0x6c] sm:$0x1] %vm987_vm10, %v1449_v33 }
 0x29c   : > { %1557 = vrot.lane.b32.xlu0 %v1529_v11, %s1936_s10  ;;  %1549 = vrot.lane.b32.xlu2 %v1525_v12, %s1936_s10 }
 0x29d   : > { %1547 = vrot.lane.b32.xlu1 %v1524_v22, %s1936_s10 }
 0x29e   : > { %v1439_v23 = vpop.permute.xlu0 %1438  ;;  %v1238_v34 = vpop.permute.xlu2 %1237 }
 0x29f   : > { %1461 = vst.msk [vmem:[%s2145_s25 + $0x1c] sm:$0x1] %vm987_vm10, %v1439_v23  ;;  %v1413_v16 = vpop.permute.xlu1 %1412 }
 0x2a0   : > { %1432 = vst.msk [vmem:[%s2145_s25 + $0x4b] sm:$0x1] %vm987_vm10, %v1413_v16 }
 0x2a4   : > { %1563 = vrot.lane.b32.xlu0 %v1532_v17, %s1936_s10  ;;  %1555 = vrot.lane.b32.xlu2 %v1528_v44, %s1936_s10 }
 0x2a5   : > { %1553 = vrot.lane.b32.xlu1 %v1527_v37, %s1936_s10 }
 0x2a6   : > { %v1445_v24 = vpop.permute.xlu0 %1444  ;;  %v1244_v38 = vpop.permute.xlu2 %1243 }
 0x2a7   : > { %1464 = vst.msk [vmem:[%s2145_s25 + $0x4c] sm:$0x1] %vm987_vm10, %v1445_v24  ;;  %v1419_v36 = vpop.permute.xlu1 %1418 }
 0x2a8   : > { %1435 = vst.msk [vmem:[%s2145_s25 + $0x7b] sm:$0x1] %vm987_vm10, %v1419_v36 }
 0x2ac   : > { %1607 = vrot.lane.b32.xlu0 %v1597_v39, %s1937_s11  ;;  %1561 = vrot.lane.b32.xlu2 %v1531_v40, %s1936_s10 }
 0x2ad   : > { %1559 = vrot.lane.b32.xlu1 %v1530_v41, %s1936_s10 }
 0x2ae   : > { %v1240_v42 = vpop.permute.xlu0 %1239  ;;  %v1250_v43 = vpop.permute.xlu2 %1249 }
 0x2af   : > { %v1270_v45 = vsel %vm1269_vm4, %v1238_v34, %v1240_v42  ;;  %v1441_v46 = vpop.permute.xlu1 %1440 }
 0x2b0   : > { %1286 = vst.msk [vmem:[%s2145_s25 + $0x7] sm:$0x1] %vm987_vm10, %v1270_v45 }
 0x2b1   : > { %1462 = vst.msk [vmem:[%s2145_s25 + $0x2c] sm:$0x1] %vm987_vm10, %v1441_v46 }
 0x2b4   : > { %1613 = vrot.lane.b32.xlu0 %v1600_v47, %s1937_s11  ;;  %1605 = vrot.lane.b32.xlu2 %v1596_v48, %s1937_s11 }
 0x2b5   : > { %1603 = vrot.lane.b32.xlu1 %v1595_v49, %s1937_s11 }
 0x2b6   : > { %v1246_v50 = vpop.permute.xlu0 %1245  ;;  %v1256_v51 = vpop.permute.xlu2 %1255 }
 0x2b7   : > { %v1447_v53 = vpop.permute.xlu1 %1446 }
 0x2b8   : > { %1465 = vst.msk [vmem:[%s2145_s25 + $0x5c] sm:$0x1] %vm987_vm10, %v1447_v53 }
 0x2bc   : > { %1611 = vrot.lane.b32.xlu2 %v1599_v54, %s1937_s11 }
 0x2bd   : > { %1609 = vrot.lane.b32.xlu1 %v1598_v55, %s1937_s11 }
 0x2be   : > { %v1252_v2 = vpop.permute.xlu0 %1251  ;;  %v1262_v56 = vpop.permute.xlu2 %1261 }
 0x2bf   : > { %v1273_v57 = vsel %vm1269_vm4, %v1250_v43, %v1252_v2  ;;  %v1242_v9 = vpop.permute.xlu1 %1241 }
 0x2c0   : > { %1289 = vst.msk [vmem:[%s2145_s25 + $0x37] sm:$0x1] %vm987_vm10, %v1273_v57  ;;  %v1271_v3 = vsel %vm1269_vm4, %v1242_v9, %v1244_v38 }
 0x2c1   : > { %1287 = vst.msk [vmem:[%s2145_s25 + $0x17] sm:$0x1] %vm987_vm10, %v1271_v3 }
 0x2c4   : > { %1617 = vrot.lane.b32.xlu2 %v1602_v59, %s1937_s11 }
 0x2c5   : > { %1615 = vrot.lane.b32.xlu1 %v1601_v60, %s1937_s11 }
 0x2c6   : > { %v1258_v61 = vpop.permute.xlu0 %1257  ;;  %v1268_v58 = vpop.permute.xlu2 %1267 }
 0x2c7   : > { %v1248_v18 = vpop.permute.xlu1 %1247 }
 0x2c8   : > { %v1272_v10 = vsel %vm1269_vm4, %v1246_v50, %v1248_v18 }
 0x2c9   : > { %1288 = vst.msk [vmem:[%s2145_s25 + $0x27] sm:$0x1] %vm987_vm10, %v1272_v10 }
 0x2ce   : > { %v1264_v30 = vpop.permute.xlu0 %1263  ;;  %v1471_v62 = vpop.permute.xlu2 %1470 }
 0x2cf   : > { %v1276_v26 = vsel %vm1269_vm4, %v1262_v56, %v1264_v30  ;;  %v1254_v63 = vpop.permute.xlu1 %1253  ;;  %1493 = vst.msk [vmem:[%s2145_s25 + $0x1d] sm:$0x1] %vm987_vm10, %v1471_v62 }
 0x2d0   : > { %1292 = vst.msk [vmem:[%s2145_s25 + $0x67] sm:$0x1] %vm987_vm10, %v1276_v26  ;;  %v1274_v0 = vsel %vm1269_vm4, %v1254_v63, %v1256_v51 }
 0x2d1   : > { %1290 = vst.msk [vmem:[%s2145_s25 + $0x47] sm:$0x1] %vm987_vm10, %v1274_v0 }
 0x2d6   : > { %v1451_v14 = vpop.permute.xlu0 %1450  ;;  %v1477_v31 = vpop.permute.xlu2 %1476 }
 0x2d7   : > { %1467 = vst.msk [vmem:[%s2145_s25 + $0x7c] sm:$0x1] %vm987_vm10, %v1451_v14  ;;  %v1260_v1 = vpop.permute.xlu1 %1259 }
 0x2d8   : > { %v1275_v4 = vsel %vm1269_vm4, %v1258_v61, %v1260_v1  ;;  %1496 = vst.msk [vmem:[%s2145_s25 + $0x4d] sm:$0x1] %vm987_vm10, %v1477_v31 }
 0x2d9   : > { %1291 = vst.msk [vmem:[%s2145_s25 + $0x57] sm:$0x1] %vm987_vm10, %v1275_v4 }
 0x2de   : > { %v1473_v21 = vpop.permute.xlu0 %1472  ;;  %v1483_v5 = vpop.permute.xlu2 %1482 }
 0x2df   : > { %1494 = vst.msk [vmem:[%s2145_s25 + $0x2d] sm:$0x1] %vm987_vm10, %v1473_v21  ;;  %v1266_v29 = vpop.permute.xlu1 %1265 }
 0x2e0   : > { %v1277_v6 = vsel %vm1269_vm4, %v1266_v29, %v1268_v58  ;;  %1499 = vst.msk [vmem:[%s2145_s25 + $0x7d] sm:$0x1] %vm987_vm10, %v1483_v5 }
 0x2e1   : > { %1293 = vst.msk [vmem:[%s2145_s25 + $0x77] sm:$0x1] %vm987_vm10, %v1277_v6 }
 0x2e6   : > { %v1479_v7 = vpop.permute.xlu0 %1478  ;;  %v1538_v32 = vpop.permute.xlu2 %1537 }
 0x2e7   : > { %1497 = vst.msk [vmem:[%s2145_s25 + $0x5d] sm:$0x1] %vm987_vm10, %v1479_v7  ;;  %v1469_v33 = vpop.permute.xlu1 %1468 }
 0x2e8   : > { %1492 = vst.msk [vmem:[%s2145_s25 + $0xd] sm:$0x1] %vm987_vm10, %v1469_v33 }
 0x2ee   : > { %v1534_v8 = vpop.permute.xlu0 %1533  ;;  %v1544_v20 = vpop.permute.xlu2 %1543 }
 0x2ef   : > { %v1475_v11 = vpop.permute.xlu1 %1474 }
 0x2f0   : > { %1495 = vst.msk [vmem:[%s2145_s25 + $0x3d] sm:$0x1] %vm987_vm10, %v1475_v11 }
 0x2f6   : > { %v1540_v12 = vpop.permute.xlu0 %1539  ;;  %v1550_v22 = vpop.permute.xlu2 %1549 }
 0x2f7   : > { %v1566_v23 = vsel %vm191_vm1, %v1538_v32, %v1540_v12  ;;  %v1481_v34 = vpop.permute.xlu1 %1480 }
 0x2f8   : > { %1582 = vst.msk [vmem:[%s2145_s25 + $0x1e] sm:$0x1] %vm987_vm10, %v1566_v23 }
 0x2f9   : > { %1498 = vst.msk [vmem:[%s2145_s25 + $0x6d] sm:$0x1] %vm987_vm10, %v1481_v34 }
 0x2fe   : > { %v1546_v13 = vpop.permute.xlu0 %1545  ;;  %v1556_v15 = vpop.permute.xlu2 %1555 }
 0x2ff   : > { %v1536_v16 = vpop.permute.xlu1 %1535 }
 0x300   : > { %v1565_v17 = vsel %vm191_vm1, %v1534_v8, %v1536_v16 }
 0x301   : > { %1581 = vst.msk [vmem:[%s2145_s25 + $0xe] sm:$0x1] %vm987_vm10, %v1565_v17 }
 0x306   : > { %v1552_v44 = vpop.permute.xlu0 %1551  ;;  %v1562_v37 = vpop.permute.xlu2 %1561 }
 0x307   : > { %v1569_v24 = vsel %vm191_vm1, %v1550_v22, %v1552_v44  ;;  %v1542_v38 = vpop.permute.xlu1 %1541 }
 0x308   : > { %1585 = vst.msk [vmem:[%s2145_s25 + $0x4e] sm:$0x1] %vm987_vm10, %v1569_v24  ;;  %v1567_v35 = vsel %vm191_vm1, %v1542_v38, %v1544_v20 }
 0x309   : > { %1583 = vst.msk [vmem:[%s2145_s25 + $0x2e] sm:$0x1] %vm987_vm10, %v1567_v35 }
 0x30e   : > { %v1558_v36 = vpop.permute.xlu0 %1557  ;;  %v1606_v39 = vpop.permute.xlu2 %1605 }
 0x30f   : > { %v1548_v40 = vpop.permute.xlu1 %1547  ;;  %1628 = vst.msk [vmem:[%s2145_s25 + $0x1f] sm:$0x1] %vm987_vm10, %v1606_v39 }
 0x310   : > { %v1568_v41 = vsel %vm191_vm1, %v1546_v13, %v1548_v40 }
 0x311   : > { %1584 = vst.msk [vmem:[%s2145_s25 + $0x3e] sm:$0x1] %vm987_vm10, %v1568_v41 }
 0x316   : > { %v1564_v42 = vpop.permute.xlu0 %1563  ;;  %v1612_v43 = vpop.permute.xlu2 %1611 }
 0x317   : > { %v1572_v25 = vsel %vm191_vm1, %v1562_v37, %v1564_v42  ;;  %v1554_v27 = vpop.permute.xlu1 %1553  ;;  %1631 = vst.msk [vmem:[%s2145_s25 + $0x4f] sm:$0x1] %vm987_vm10, %v1612_v43 }
 0x318   : > { %1588 = vst.msk [vmem:[%s2145_s25 + $0x7e] sm:$0x1] %vm987_vm10, %v1572_v25  ;;  %v1570_v45 = vsel %vm191_vm1, %v1554_v27, %v1556_v15 }
 0x319   : > { %1586 = vst.msk [vmem:[%s2145_s25 + $0x5e] sm:$0x1] %vm987_vm10, %v1570_v45 }
 0x31e   : > { %v1608_v46 = vpop.permute.xlu0 %1607  ;;  %v1618_v47 = vpop.permute.xlu2 %1617 }
 0x31f   : > { %1629 = vst.msk [vmem:[%s2145_s25 + $0x2f] sm:$0x1] %vm987_vm10, %v1608_v46  ;;  %v1560_v48 = vpop.permute.xlu1 %1559 }
 0x320   : > { %v1571_v49 = vsel %vm191_vm1, %v1558_v36, %v1560_v48  ;;  %1634 = vst.msk [vmem:[%s2145_s25 + $0x7f] sm:$0x1] %vm987_vm10, %v1618_v47 }
 0x321   : > { %1587 = vst.msk [vmem:[%s2145_s25 + $0x6e] sm:$0x1] %vm987_vm10, %v1571_v49 }
 0x326   : > { %v1614_v50 = vpop.permute.xlu0 %1613 }
 0x327   : > { %1632 = vst.msk [vmem:[%s2145_s25 + $0x5f] sm:$0x1] %vm987_vm10, %v1614_v50  ;;  %v1604_v51 = vpop.permute.xlu1 %1603 }
 0x328   : > { %1627 = vst.msk [vmem:[%s2145_s25 + $0xf] sm:$0x1] %vm987_vm10, %v1604_v51 }
 0x32f   : > { %v1610_v52 = vpop.permute.xlu1 %1609 }
 0x330   : > { %1630 = vst.msk [vmem:[%s2145_s25 + $0x3f] sm:$0x1] %vm987_vm10, %v1610_v52 }
 0x337   : > { %v1616_v53 = vpop.permute.xlu1 %1615 }
 0x338   : > { %1633 = vst.msk [vmem:[%s2145_s25 + $0x6f] sm:$0x1] %vm987_vm10, %v1616_v53 }
 0x339   : > { %1879 = shalt.err (!%p1876_p3)
}
 0x33a   : > { %s1938_s20 = smov 128   ;;  %s1939_s25 = smov 8  }
 0x33b   : > { %1788 = dma.vmem_to_hbm [thread:$0]  (%p1998_p5), %s1649_s27, 2048, %s1651_s28, %s1636_s29, %s1938_s20, %s1938_s20, %s1939_s25  }
 0x33c PF: > { %p1794_p4 = scmp.ge.s32.totalorder %s1914_s15, 2  ;;  %s1665_s9 = sand.u32 1, %s1902_s12  }
 0x33d   : > { %s1666_s10 = scalar_lea.sflag [#allocation3], %s1665_s9 }
 0x33e   : > { %p1791_p7 = pnand %p1794_p4, %p2002_p6 }
 0x340   : > { %p1792_p8 = pneg %p1791_p7 }
 0x342   : > { %1897 = dma.done.wait (%p1792_p8), %s1666_s10, 2048  }
 0x343   : > { %1899 = vsyncadd (%p1792_p8), %s1666_s10, 4294965248  ;;  %p13_p9 = scmp.ge.s32.totalorder %s1985_s18, 4   ;;  %s2819_s12 = smov %s1906_s13 }
 0x344   : > { %s2820_s13 = smov %s1910_s14  ;;  %s2821_s14 = smov %s1996_s21 }
 0x345   : > { %s2822_s15 = smov %s1985_s18  ;;  %15 = sbr.rel (!%p13_p9) target bundleno = 3 (0x3), region = 84 }
 0x34a   :  { %1672 = vsyncpa [#allocation3], 1 }
 0x34b   :  { %1674 = vsyncpa [#allocation3 + $0x1], 1 }

</bundles_post_ra>
